<compile_context>
chip_gen: v6e
topology: v6e:2x2x1
jax: 0.10.0
libtpu: 0.0.40
codegen_flags: <defaults>
</compile_context>

<pallas_src>
import functools

import jax
import jax.numpy as jnp
import numpy as np
from jax import lax
from jax.experimental import pallas as pl
from jax.experimental.pallas import tpu as pltpu

LN_EPS = 1e-5


def _layer_norm(x, gamma, beta):
    mean = jnp.mean(x, axis=-1, keepdims=True)
    var = jnp.mean((x - mean) ** 2, axis=-1, keepdims=True)
    return (x - mean) * lax.rsqrt(var + LN_EPS) * gamma + beta


def transformer_stack_kernel(x_ref,
                             ln1_g_ref, ln1_b_ref,
                             wq_ref, wk_ref, wv_ref, wp_ref, bp_ref,
                             ln2_g_ref, ln2_b_ref,
                             w1_ref, b1_ref, w2_ref, b2_ref,
                             o_ref, x_scratch, *, num_heads):
    """One grid step == one TransformerLayer applied to one batch element."""
    layer = pl.program_id(1)
    num_layers = pl.num_programs(1)

    @pl.when(layer == 0)
    def _():
        x_scratch[...] = x_ref[...].astype(jnp.float32)

    x = x_scratch[...]                               # (N, C) f32 residual stream
    n, c = x.shape
    d = c // num_heads
    scale = d ** (-0.5)

    # ---------------- attention block ----------------
    xn = _layer_norm(x, ln1_g_ref[...], ln1_b_ref[...])
    xn_b = xn.astype(jnp.bfloat16)

    q = jnp.dot(xn_b, wq_ref[...], preferred_element_type=jnp.float32)    # (N, C)
    k = jnp.dot(xn_b, wk_ref[...], preferred_element_type=jnp.float32)    # (N, C)
    v = jnp.dot(xn_b, wv_ref[...], preferred_element_type=jnp.float32)    # (N, C)

    # Head-batched attention: one batched dot_general for scores and one for
    # P@V (heads are the batch dim) — no per-head loop, no lane concatenates.
    qh = q.reshape(n, num_heads, d).swapaxes(0, 1).astype(jnp.bfloat16)   # (H,N,d)
    kh = k.reshape(n, num_heads, d).swapaxes(0, 1).astype(jnp.bfloat16)   # (H,M,d)
    vh = v.reshape(n, num_heads, d).swapaxes(0, 1).astype(jnp.bfloat16)   # (H,M,d)

    s = jnp.einsum('hnd,hmd->hnm', qh, kh,
                   preferred_element_type=jnp.float32) * scale            # (H,N,M)
    s = s - jnp.max(s, axis=-1, keepdims=True)
    p = jnp.exp(s)
    p = p * pl.reciprocal(jnp.sum(p, axis=-1, keepdims=True), approx=True)

    ctx = jnp.einsum('hnm,hmd->hnd', p.astype(jnp.bfloat16), vh,
                     preferred_element_type=jnp.float32)                  # (H,N,d)
    attn = ctx.swapaxes(0, 1).reshape(n, c)                               # (N, C)

    attn = jnp.dot(attn.astype(jnp.bfloat16), wp_ref[...],
                   preferred_element_type=jnp.float32) + bp_ref[...]
    x = x + attn

    # ---------------- MLP block ----------------
    xn2 = _layer_norm(x, ln2_g_ref[...], ln2_b_ref[...])
    h1 = jnp.dot(xn2.astype(jnp.bfloat16), w1_ref[...],
                 preferred_element_type=jnp.float32) + b1_ref[...]
    h1 = jnp.maximum(h1, 0.0)                                             # relu
    h2 = jnp.dot(h1.astype(jnp.bfloat16), w2_ref[...],
                 preferred_element_type=jnp.float32) + b2_ref[...]
    x = x + h2

    x_scratch[...] = x

    @pl.when(layer == num_layers - 1)
    def _():
        o_ref[...] = x.astype(o_ref.dtype)

# TODO(synk): mask / cross-attention (y != None) and enc_dec branching are not
# exercised by the default forward (y=None, mask=None, enc_dec=False) and are
# not implemented in the kernel.


def transformer_forward(x, params, num_heads):
    """Matches Transformer.forward with enc_dec=False (pure self-attention)."""
    B, N, C = x.shape
    L = len(params)
    Hm = params[0]['w1'].shape[1]

    def stack(key):
        return jnp.stack([p[key] for p in params], axis=0)

    # bf16 MXU weights (kernel accumulates in f32); small params stay f32.
    wq = stack('wq').astype(jnp.bfloat16)               # (L, C, C)
    wk = stack('wkv')[:, :, :C].astype(jnp.bfloat16)    # (L, C, C)  keys half
    wv = stack('wkv')[:, :, C:].astype(jnp.bfloat16)    # (L, C, C)  values half
    wp = stack('wp').astype(jnp.bfloat16)               # (L, C, C)
    w1 = stack('w1').astype(jnp.bfloat16)               # (L, C, Hm)
    w2 = stack('w2').astype(jnp.bfloat16)               # (L, Hm, C)
    bp, b1, b2 = stack('bp'), stack('b1'), stack('b2')
    ln1_g, ln1_b = stack('ln1_g'), stack('ln1_b')
    ln2_g, ln2_b = stack('ln2_g'), stack('ln2_b')

    def wspec(shape):
        # Weight block: indexed by the layer axis only (constant across batch),
        # so the pipeline prefetches layer l+1 weights during layer l compute.
        return pl.BlockSpec((None,) + shape,
                            lambda b, l: (l,) + (0,) * len(shape))

    flops = B * L * (8 * N * C * C + 4 * N * N * C + 4 * N * C * Hm)
    transcendentals = B * L * num_heads * N * N
    bytes_accessed = (2 * L * (4 * C * C + 2 * C * Hm)       # bf16 matmul weights
                      + 4 * L * (5 * C + Hm)                 # f32 biases / LN params
                      + 4 * B * N * C * 2)                   # x in + out

    kernel = functools.partial(transformer_stack_kernel, num_heads=num_heads)
    return pl.pallas_call(
        kernel,
        out_shape=jax.ShapeDtypeStruct((B, N, C), x.dtype),
        grid=(B, L),
        in_specs=[
            pl.BlockSpec((None, N, C), lambda b, l: (b, 0, 0)),   # x
            wspec((1, C)), wspec((1, C)),                         # ln1 gamma / beta
            wspec((C, C)), wspec((C, C)), wspec((C, C)),          # Wq, Wk, Wv
            wspec((C, C)), wspec((1, C)),                         # Wproj, bproj
            wspec((1, C)), wspec((1, C)),                         # ln2 gamma / beta
            wspec((C, Hm)), wspec((1, Hm)),                       # fc1 W, b
            wspec((Hm, C)), wspec((1, C)),                        # fc2 W, b
        ],
        out_specs=pl.BlockSpec((None, N, C), lambda b, l: (b, 0, 0)),
        scratch_shapes=[pltpu.VMEM((N, C), jnp.float32)],
        compiler_params=pltpu.CompilerParams(
            dimension_semantics=("parallel", "arbitrary"),
            vmem_limit_bytes=32 * 1024 * 1024),
        cost_estimate=pl.CostEstimate(flops=flops,
                                      transcendentals=transcendentals,
                                      bytes_accessed=bytes_accessed),
    )(x, ln1_g, ln1_b, wq, wk, wv, wp, bp, ln2_g, ln2_b, w1, b1, w2, b2)


# ---------------- pure-JAX f32 reference (for correctness check) ----------------
def _layer_ref(x, p, num_heads):
    def ln(z, g, b):
        mean = z.mean(-1, keepdims=True)
        var = ((z - mean) ** 2).mean(-1, keepdims=True)
        return (z - mean) / jnp.sqrt(var + LN_EPS) * g + b

    B, N, C = x.shape
    d = C // num_heads
    xn = ln(x, p['ln1_g'], p['ln1_b'])
    q = xn @ p['wq']
    kv = xn @ p['wkv']
    k, v = kv[..., :C], kv[..., C:]
    q = q.reshape(B, N, num_heads, d)
    k = k.reshape(B, N, num_heads, d)
    v = v.reshape(B, N, num_heads, d)
    att = jnp.einsum('bnhd,bmhd->bnmh', q, k) * d ** (-0.5)
    att = jax.nn.softmax(att, axis=2)
    out = jnp.einsum('bnmh,bmhd->bnhd', att, v).reshape(B, N, C)
    out = out @ p['wp'] + p['bp']
    x = x + out
    xn2 = ln(x, p['ln2_g'], p['ln2_b'])
    h = jnp.maximum(xn2 @ p['w1'] + p['b1'], 0.0)
    return x + (h @ p['w2'] + p['b2'])


def transformer_ref(x, params, num_heads):
    for p in params:
        x = _layer_ref(x, p, num_heads)
    return x


def init_params(key, num_layers, dim_self, mlp_ratio):
    C = dim_self
    H = int(dim_self * mlp_ratio)
    params = []
    for _ in range(num_layers):
        key, k0, k1, k2, k3, k4, k5 = jax.random.split(key, 7)
        params.append(dict(
            ln1_g=jnp.ones((1, C), jnp.float32),
            ln1_b=jnp.zeros((1, C), jnp.float32),
            wq=0.02 * jax.random.normal(k0, (C, C), jnp.float32),
            wkv=0.02 * jax.random.normal(k1, (C, 2 * C), jnp.float32),
            wp=0.02 * jax.random.normal(k2, (C, C), jnp.float32),
            bp=0.01 * jax.random.normal(k3, (1, C), jnp.float32),
            ln2_g=jnp.ones((1, C), jnp.float32),
            ln2_b=jnp.zeros((1, C), jnp.float32),
            w1=0.02 * jax.random.normal(k4, (C, H), jnp.float32),
            b1=jnp.zeros((1, H), jnp.float32),
            w2=0.02 * jax.random.normal(k5, (H, C), jnp.float32),
            b2=jnp.zeros((1, C), jnp.float32),
        ))
    return params


if __name__ == "__main__":
    # Transformer(dim_self=32, num_heads=4, num_layers=2, mlp_ratio=2.0,
    #             enc_dec=False) — forward(x) with x: (B=2, N=8, C=32)
    B, N, C = 2, 8, 32
    num_heads, num_layers, mlp_ratio = 4, 2, 2.0

    key = jax.random.PRNGKey(0)
    kx, kp = jax.random.split(key)
    x = jax.random.normal(kx, (B, N, C), jnp.float32)
    params = init_params(kp, num_layers, C, mlp_ratio)

    out = jax.block_until_ready(transformer_forward(x, params, num_heads))

    ref = jax.block_until_ready(transformer_ref(x, params, num_heads))
    # bf16 MXU operands (+ approx reciprocal) => loosened tolerance vs f32 ref.
    np.testing.assert_allclose(np.asarray(out), np.asarray(ref),
                               rtol=2e-2, atol=2e-2)

    print("KERNEL_OK")
</pallas_src>

<mosaic_0001>
module attributes {stable_mosaic.version = 11 : i64} {
  func.func @transformer_stack_kernel(%arg0: i32, %arg1: i32, %arg2: memref<1x8x32xf32, #tpu.memory_space<vmem>>, %arg3: memref<1x1x32xf32, #tpu.memory_space<vmem>>, %arg4: memref<1x1x32xf32, #tpu.memory_space<vmem>>, %arg5: memref<1x32x32xbf16, #tpu.memory_space<vmem>>, %arg6: memref<1x32x32xbf16, #tpu.memory_space<vmem>>, %arg7: memref<1x32x32xbf16, #tpu.memory_space<vmem>>, %arg8: memref<1x32x32xbf16, #tpu.memory_space<vmem>>, %arg9: memref<1x1x32xf32, #tpu.memory_space<vmem>>, %arg10: memref<1x1x32xf32, #tpu.memory_space<vmem>>, %arg11: memref<1x1x32xf32, #tpu.memory_space<vmem>>, %arg12: memref<1x32x64xbf16, #tpu.memory_space<vmem>>, %arg13: memref<1x1x64xf32, #tpu.memory_space<vmem>>, %arg14: memref<1x64x32xbf16, #tpu.memory_space<vmem>>, %arg15: memref<1x1x32xf32, #tpu.memory_space<vmem>>, %arg16: memref<1x8x32xf32, #tpu.memory_space<vmem>>, %arg17: memref<8x32xf32, #tpu.memory_space<vmem>>) attributes {dimension_semantics = [#tpu.dimension_semantics<parallel>, #tpu.dimension_semantics<arbitrary>], iteration_bounds = array<i64: 2, 2>, scalar_prefetch = 0 : i64, scratch_operands = 1 : i64, tpu.core_type = #tpu.core_type<tc>, window_params = [{transform_indices = @transform_0, window_bounds = array<i64: 1, 8, 32>}, {transform_indices = @transform_1, window_bounds = array<i64: 1, 1, 32>}, {transform_indices = @transform_2, window_bounds = array<i64: 1, 1, 32>}, {transform_indices = @transform_3, window_bounds = array<i64: 1, 32, 32>}, {transform_indices = @transform_4, window_bounds = array<i64: 1, 32, 32>}, {transform_indices = @transform_5, window_bounds = array<i64: 1, 32, 32>}, {transform_indices = @transform_6, window_bounds = array<i64: 1, 32, 32>}, {transform_indices = @transform_7, window_bounds = array<i64: 1, 1, 32>}, {transform_indices = @transform_8, window_bounds = array<i64: 1, 1, 32>}, {transform_indices = @transform_9, window_bounds = array<i64: 1, 1, 32>}, {transform_indices = @transform_10, window_bounds = array<i64: 1, 32, 64>}, {transform_indices = @transform_11, window_bounds = array<i64: 1, 1, 64>}, {transform_indices = @transform_12, window_bounds = array<i64: 1, 64, 32>}, {transform_indices = @transform_13, window_bounds = array<i64: 1, 1, 32>}, {transform_indices = @transform_14, window_bounds = array<i64: 1, 8, 32>}]} {
    %c0_i32 = arith.constant 0 : i32
    %0 = arith.cmpi eq, %arg1, %c0_i32 : i32
    %1 = arith.extui %0 : i1 to i32
    %c0_i32_0 = arith.constant 0 : i32
    %2 = arith.cmpi ne, %1, %c0_i32_0 : i32
    scf.if %2 {
      %c0_65 = arith.constant 0 : index
      %c0_66 = arith.constant 0 : index
      %c0_67 = arith.constant 0 : index
      %124 = vector.load %arg2[%c0_65, %c0_66, %c0_67] : memref<1x8x32xf32, #tpu.memory_space<vmem>>, vector<1x8x32xf32>
      %125 = vector.shape_cast %124 : vector<1x8x32xf32> to vector<8x32xf32>
      %c0_68 = arith.constant 0 : index
      %c0_69 = arith.constant 0 : index
      %126 = vector.load %arg17[%c0_68, %c0_69] : memref<8x32xf32, #tpu.memory_space<vmem>>, vector<8x32xf32>
      tpu.vector_store %arg17[%c0_68, %c0_69], %125 {strides = array<i32>} : memref<8x32xf32, #tpu.memory_space<vmem>>, vector<8x32xf32>,
    } else {
    }
    %c0 = arith.constant 0 : index
    %c0_1 = arith.constant 0 : index
    %3 = vector.load %arg17[%c0, %c0_1] : memref<8x32xf32, #tpu.memory_space<vmem>>, vector<8x32xf32>
    %c0_2 = arith.constant 0 : index
    %c0_3 = arith.constant 0 : index
    %c0_4 = arith.constant 0 : index
    %4 = vector.load %arg3[%c0_2, %c0_3, %c0_4] : memref<1x1x32xf32, #tpu.memory_space<vmem>>, vector<1x1x32xf32>
    %5 = vector.shape_cast %4 : vector<1x1x32xf32> to vector<1x32xf32>
    %c0_5 = arith.constant 0 : index
    %c0_6 = arith.constant 0 : index
    %c0_7 = arith.constant 0 : index
    %6 = vector.load %arg4[%c0_5, %c0_6, %c0_7] : memref<1x1x32xf32, #tpu.memory_space<vmem>>, vector<1x1x32xf32>
    %7 = vector.shape_cast %6 : vector<1x1x32xf32> to vector<1x32xf32>
    %cst = arith.constant dense<0.000000e+00> : vector<8xf32>
    %8 = vector.multi_reduction <add>, %3, %cst [1] : vector<8x32xf32> to vector<8xf32>
    %9 = vector.shape_cast %8 : vector<8xf32> to vector<8x1xf32>
    %cst_8 = arith.constant 3.200000e+01 : f32
    %10 = vector.broadcast %cst_8 : f32 to vector<8x1xf32>
    %11 = arith.divf %9, %10 : vector<8x1xf32>
    %12 = vector.broadcast %11 : vector<8x1xf32> to vector<8x32xf32>
    %13 = arith.subf %3, %12 : vector<8x32xf32>
    %14 = arith.mulf %13, %13 : vector<8x32xf32>
    %cst_9 = arith.constant dense<0.000000e+00> : vector<8xf32>
    %15 = vector.multi_reduction <add>, %14, %cst_9 [1] : vector<8x32xf32> to vector<8xf32>
    %16 = vector.shape_cast %15 : vector<8xf32> to vector<8x1xf32>
    %cst_10 = arith.constant 3.200000e+01 : f32
    %17 = vector.broadcast %cst_10 : f32 to vector<8x1xf32>
    %18 = arith.divf %16, %17 : vector<8x1xf32>
    %19 = vector.broadcast %11 : vector<8x1xf32> to vector<8x32xf32>
    %20 = arith.subf %3, %19 : vector<8x32xf32>
    %cst_11 = arith.constant 9.99999974E-6 : f32
    %21 = vector.broadcast %cst_11 : f32 to vector<8x1xf32>
    %22 = arith.addf %18, %21 : vector<8x1xf32>
    %23 = math.rsqrt %22 : vector<8x1xf32>
    %24 = vector.broadcast %23 : vector<8x1xf32> to vector<8x32xf32>
    %25 = arith.mulf %20, %24 : vector<8x32xf32>
    %26 = vector.broadcast %5 : vector<1x32xf32> to vector<8x32xf32>
    %27 = arith.mulf %25, %26 : vector<8x32xf32>
    %28 = vector.broadcast %7 : vector<1x32xf32> to vector<8x32xf32>
    %29 = arith.addf %27, %28 : vector<8x32xf32>
    %30 = arith.truncf %29 : vector<8x32xf32> to vector<8x32xbf16>
    %c0_12 = arith.constant 0 : index
    %c0_13 = arith.constant 0 : index
    %c0_14 = arith.constant 0 : index
    %31 = vector.load %arg5[%c0_12, %c0_13, %c0_14] : memref<1x32x32xbf16, #tpu.memory_space<vmem>>, vector<1x32x32xbf16>
    %32 = vector.shape_cast %31 : vector<1x32x32xbf16> to vector<32x32xbf16>
    %cst_15 = arith.constant dense<0.000000e+00> : vector<8x32xf32>
    %33 = tpu.matmul %30, %32, %cst_15 {dimension_numbers = #tpu.dot_dimension_numbers<[1], [0], [0], [1], [0, 0, 1, 1], [], []>} : vector<8x32xbf16>, vector<32x32xbf16>, vector<8x32xf32> -> vector<8x32xf32>
    %c0_16 = arith.constant 0 : index
    %c0_17 = arith.constant 0 : index
    %c0_18 = arith.constant 0 : index
    %34 = vector.load %arg6[%c0_16, %c0_17, %c0_18] : memref<1x32x32xbf16, #tpu.memory_space<vmem>>, vector<1x32x32xbf16>
    %35 = vector.shape_cast %34 : vector<1x32x32xbf16> to vector<32x32xbf16>
    %cst_19 = arith.constant dense<0.000000e+00> : vector<8x32xf32>
    %36 = tpu.matmul %30, %35, %cst_19 {dimension_numbers = #tpu.dot_dimension_numbers<[1], [0], [0], [1], [0, 0, 1, 1], [], []>} : vector<8x32xbf16>, vector<32x32xbf16>, vector<8x32xf32> -> vector<8x32xf32>
    %c0_20 = arith.constant 0 : index
    %c0_21 = arith.constant 0 : index
    %c0_22 = arith.constant 0 : index
    %37 = vector.load %arg7[%c0_20, %c0_21, %c0_22] : memref<1x32x32xbf16, #tpu.memory_space<vmem>>, vector<1x32x32xbf16>
    %38 = vector.shape_cast %37 : vector<1x32x32xbf16> to vector<32x32xbf16>
    %cst_23 = arith.constant dense<0.000000e+00> : vector<8x32xf32>
    %39 = tpu.matmul %30, %38, %cst_23 {dimension_numbers = #tpu.dot_dimension_numbers<[1], [0], [0], [1], [0, 0, 1, 1], [], []>} : vector<8x32xbf16>, vector<32x32xbf16>, vector<8x32xf32> -> vector<8x32xf32>
    %40 = vector.shape_cast %33 : vector<8x32xf32> to vector<8x4x8xf32>
    %41 = tpu.transpose %40, [1, 0, 2] : vector<8x4x8xf32> -> vector<4x8x8xf32>
    %42 = arith.truncf %41 : vector<4x8x8xf32> to vector<4x8x8xbf16>
    %43 = vector.shape_cast %36 : vector<8x32xf32> to vector<8x4x8xf32>
    %44 = tpu.transpose %43, [1, 0, 2] : vector<8x4x8xf32> -> vector<4x8x8xf32>
    %45 = arith.truncf %44 : vector<4x8x8xf32> to vector<4x8x8xbf16>
    %46 = vector.shape_cast %39 : vector<8x32xf32> to vector<8x4x8xf32>
    %47 = tpu.transpose %46, [1, 0, 2] : vector<8x4x8xf32> -> vector<4x8x8xf32>
    %48 = arith.truncf %47 : vector<4x8x8xf32> to vector<4x8x8xbf16>
    "tpu.trace_start"() <{level = 10 : i32, message = "hnd,hmd->hnm"}> : () -> ()
    %cst_24 = arith.constant dense<0.000000e+00> : vector<4x8x8xf32>
    %49 = tpu.matmul %42, %45, %cst_24 {dimension_numbers = #tpu.dot_dimension_numbers<[2], [2], [1], [1], [0, 0, 0, 1, 1, 1], [0], [0]>} : vector<4x8x8xbf16>, vector<4x8x8xbf16>, vector<4x8x8xf32> -> vector<4x8x8xf32>
    "tpu.trace_stop"() : () -> ()
    %cst_25 = arith.constant 0.353553385 : f32
    %50 = vector.broadcast %cst_25 : f32 to vector<4x8x8xf32>
    %51 = arith.mulf %49, %50 : vector<4x8x8xf32>
    %cst_26 = arith.constant dense<0xFF800000> : vector<4x8xf32>
    %52 = vector.multi_reduction <maximumf>, %51, %cst_26 [2] : vector<4x8x8xf32> to vector<4x8xf32>
    %53 = vector.shape_cast %52 : vector<4x8xf32> to vector<4x8x1xf32>
    %54 = vector.broadcast %53 : vector<4x8x1xf32> to vector<4x8x8xf32>
    %55 = arith.subf %51, %54 : vector<4x8x8xf32>
    %56 = math.exp %55 : vector<4x8x8xf32>
    %cst_27 = arith.constant dense<0.000000e+00> : vector<4x8xf32>
    %57 = vector.multi_reduction <add>, %56, %cst_27 [2] : vector<4x8x8xf32> to vector<4x8xf32>
    %58 = vector.shape_cast %57 : vector<4x8xf32> to vector<4x8x1xf32>
    %59 = tpu.reciprocal %58 {approx = true} : vector<4x8x1xf32> -> vector<4x8x1xf32>
    %60 = vector.broadcast %59 : vector<4x8x1xf32> to vector<4x8x8xf32>
    %61 = arith.mulf %56, %60 : vector<4x8x8xf32>
    %62 = arith.truncf %61 : vector<4x8x8xf32> to vector<4x8x8xbf16>
    "tpu.trace_start"() <{level = 10 : i32, message = "hnm,hmd->hnd"}> : () -> ()
    %cst_28 = arith.constant dense<0.000000e+00> : vector<4x8x8xf32>
    %63 = tpu.matmul %62, %48, %cst_28 {dimension_numbers = #tpu.dot_dimension_numbers<[2], [1], [1], [2], [0, 0, 0, 1, 1, 2], [0], [0]>} : vector<4x8x8xbf16>, vector<4x8x8xbf16>, vector<4x8x8xf32> -> vector<4x8x8xf32>
    "tpu.trace_stop"() : () -> ()
    %64 = tpu.transpose %63, [1, 0, 2] : vector<4x8x8xf32> -> vector<8x4x8xf32>
    %65 = vector.shape_cast %64 : vector<8x4x8xf32> to vector<8x32xf32>
    %66 = arith.truncf %65 : vector<8x32xf32> to vector<8x32xbf16>
    %c0_29 = arith.constant 0 : index
    %c0_30 = arith.constant 0 : index
    %c0_31 = arith.constant 0 : index
    %67 = vector.load %arg8[%c0_29, %c0_30, %c0_31] : memref<1x32x32xbf16, #tpu.memory_space<vmem>>, vector<1x32x32xbf16>
    %68 = vector.shape_cast %67 : vector<1x32x32xbf16> to vector<32x32xbf16>
    %cst_32 = arith.constant dense<0.000000e+00> : vector<8x32xf32>
    %69 = tpu.matmul %66, %68, %cst_32 {dimension_numbers = #tpu.dot_dimension_numbers<[1], [0], [0], [1], [0, 0, 1, 1], [], []>} : vector<8x32xbf16>, vector<32x32xbf16>, vector<8x32xf32> -> vector<8x32xf32>
    %c0_33 = arith.constant 0 : index
    %c0_34 = arith.constant 0 : index
    %c0_35 = arith.constant 0 : index
    %70 = vector.load %arg9[%c0_33, %c0_34, %c0_35] : memref<1x1x32xf32, #tpu.memory_space<vmem>>, vector<1x1x32xf32>
    %71 = vector.shape_cast %70 : vector<1x1x32xf32> to vector<1x32xf32>
    %72 = vector.broadcast %71 : vector<1x32xf32> to vector<8x32xf32>
    %73 = arith.addf %69, %72 : vector<8x32xf32>
    %74 = arith.addf %3, %73 : vector<8x32xf32>
    %c0_36 = arith.constant 0 : index
    %c0_37 = arith.constant 0 : index
    %c0_38 = arith.constant 0 : index
    %75 = vector.load %arg10[%c0_36, %c0_37, %c0_38] : memref<1x1x32xf32, #tpu.memory_space<vmem>>, vector<1x1x32xf32>
    %76 = vector.shape_cast %75 : vector<1x1x32xf32> to vector<1x32xf32>
    %c0_39 = arith.constant 0 : index
    %c0_40 = arith.constant 0 : index
    %c0_41 = arith.constant 0 : index
    %77 = vector.load %arg11[%c0_39, %c0_40, %c0_41] : memref<1x1x32xf32, #tpu.memory_space<vmem>>, vector<1x1x32xf32>
    %78 = vector.shape_cast %77 : vector<1x1x32xf32> to vector<1x32xf32>
    %cst_42 = arith.constant dense<0.000000e+00> : vector<8xf32>
    %79 = vector.multi_reduction <add>, %74, %cst_42 [1] : vector<8x32xf32> to vector<8xf32>
    %80 = vector.shape_cast %79 : vector<8xf32> to vector<8x1xf32>
    %cst_43 = arith.constant 3.200000e+01 : f32
    %81 = vector.broadcast %cst_43 : f32 to vector<8x1xf32>
    %82 = arith.divf %80, %81 : vector<8x1xf32>
    %83 = vector.broadcast %82 : vector<8x1xf32> to vector<8x32xf32>
    %84 = arith.subf %74, %83 : vector<8x32xf32>
    %85 = arith.mulf %84, %84 : vector<8x32xf32>
    %cst_44 = arith.constant dense<0.000000e+00> : vector<8xf32>
    %86 = vector.multi_reduction <add>, %85, %cst_44 [1] : vector<8x32xf32> to vector<8xf32>
    %87 = vector.shape_cast %86 : vector<8xf32> to vector<8x1xf32>
    %cst_45 = arith.constant 3.200000e+01 : f32
    %88 = vector.broadcast %cst_45 : f32 to vector<8x1xf32>
    %89 = arith.divf %87, %88 : vector<8x1xf32>
    %90 = vector.broadcast %82 : vector<8x1xf32> to vector<8x32xf32>
    %91 = arith.subf %74, %90 : vector<8x32xf32>
    %cst_46 = arith.constant 9.99999974E-6 : f32
    %92 = vector.broadcast %cst_46 : f32 to vector<8x1xf32>
    %93 = arith.addf %89, %92 : vector<8x1xf32>
    %94 = math.rsqrt %93 : vector<8x1xf32>
    %95 = vector.broadcast %94 : vector<8x1xf32> to vector<8x32xf32>
    %96 = arith.mulf %91, %95 : vector<8x32xf32>
    %97 = vector.broadcast %76 : vector<1x32xf32> to vector<8x32xf32>
    %98 = arith.mulf %96, %97 : vector<8x32xf32>
    %99 = vector.broadcast %78 : vector<1x32xf32> to vector<8x32xf32>
    %100 = arith.addf %98, %99 : vector<8x32xf32>
    %101 = arith.truncf %100 : vector<8x32xf32> to vector<8x32xbf16>
    %c0_47 = arith.constant 0 : index
    %c0_48 = arith.constant 0 : index
    %c0_49 = arith.constant 0 : index
    %102 = vector.load %arg12[%c0_47, %c0_48, %c0_49] : memref<1x32x64xbf16, #tpu.memory_space<vmem>>, vector<1x32x64xbf16>
    %103 = vector.shape_cast %102 : vector<1x32x64xbf16> to vector<32x64xbf16>
    %cst_50 = arith.constant dense<0.000000e+00> : vector<8x64xf32>
    %104 = tpu.matmul %101, %103, %cst_50 {dimension_numbers = #tpu.dot_dimension_numbers<[1], [0], [0], [1], [0, 0, 1, 1], [], []>} : vector<8x32xbf16>, vector<32x64xbf16>, vector<8x64xf32> -> vector<8x64xf32>
    %c0_51 = arith.constant 0 : index
    %c0_52 = arith.constant 0 : index
    %c0_53 = arith.constant 0 : index
    %105 = vector.load %arg13[%c0_51, %c0_52, %c0_53] : memref<1x1x64xf32, #tpu.memory_space<vmem>>, vector<1x1x64xf32>
    %106 = vector.shape_cast %105 : vector<1x1x64xf32> to vector<1x64xf32>
    %107 = vector.broadcast %106 : vector<1x64xf32> to vector<8x64xf32>
    %108 = arith.addf %104, %107 : vector<8x64xf32>
    %cst_54 = arith.constant 0.000000e+00 : f32
    %109 = vector.broadcast %cst_54 : f32 to vector<8x64xf32>
    %110 = arith.maximumf %108, %109 : vector<8x64xf32>
    %111 = arith.truncf %110 : vector<8x64xf32> to vector<8x64xbf16>
    %c0_55 = arith.constant 0 : index
    %c0_56 = arith.constant 0 : index
    %c0_57 = arith.constant 0 : index
    %112 = vector.load %arg14[%c0_55, %c0_56, %c0_57] : memref<1x64x32xbf16, #tpu.memory_space<vmem>>, vector<1x64x32xbf16>
    %113 = vector.shape_cast %112 : vector<1x64x32xbf16> to vector<64x32xbf16>
    %cst_58 = arith.constant dense<0.000000e+00> : vector<8x32xf32>
    %114 = tpu.matmul %111, %113, %cst_58 {dimension_numbers = #tpu.dot_dimension_numbers<[1], [0], [0], [1], [0, 0, 1, 1], [], []>} : vector<8x64xbf16>, vector<64x32xbf16>, vector<8x32xf32> -> vector<8x32xf32>
    %c0_59 = arith.constant 0 : index
    %c0_60 = arith.constant 0 : index
    %c0_61 = arith.constant 0 : index
    %115 = vector.load %arg15[%c0_59, %c0_60, %c0_61] : memref<1x1x32xf32, #tpu.memory_space<vmem>>, vector<1x1x32xf32>
    %116 = vector.shape_cast %115 : vector<1x1x32xf32> to vector<1x32xf32>
    %117 = vector.broadcast %116 : vector<1x32xf32> to vector<8x32xf32>
    %118 = arith.addf %114, %117 : vector<8x32xf32>
    %119 = arith.addf %74, %118 : vector<8x32xf32>
    %c0_62 = arith.constant 0 : index
    %c0_63 = arith.constant 0 : index
    %120 = vector.load %arg17[%c0_62, %c0_63] : memref<8x32xf32, #tpu.memory_space<vmem>>, vector<8x32xf32>
    tpu.vector_store %arg17[%c0_62, %c0_63], %119 {strides = array<i32>} : memref<8x32xf32, #tpu.memory_space<vmem>>, vector<8x32xf32>,
    %c1_i32 = arith.constant 1 : i32
    %121 = arith.cmpi eq, %arg1, %c1_i32 : i32
    %122 = arith.extui %121 : i1 to i32
    %c0_i32_64 = arith.constant 0 : i32
    %123 = arith.cmpi ne, %122, %c0_i32_64 : i32
    scf.if %123 {
      %c0_65 = arith.constant 0 : index
      %c0_66 = arith.constant 0 : index
      %c0_67 = arith.constant 0 : index
      %124 = vector.load %arg16[%c0_65, %c0_66, %c0_67] : memref<1x8x32xf32, #tpu.memory_space<vmem>>, vector<1x8x32xf32>
      %125 = vector.shape_cast %124 : vector<1x8x32xf32> to vector<8x32xf32>
      %126 = vector.shape_cast %119 : vector<8x32xf32> to vector<1x8x32xf32>
      tpu.vector_store %arg16[%c0_65, %c0_66, %c0_67], %126 {strides = array<i32>} : memref<1x8x32xf32, #tpu.memory_space<vmem>>, vector<1x8x32xf32>,
    } else {
    }
    return
  }
  func.func @transform_0(%arg0: i32, %arg1: i32) -> (i32, i32, i32) {
    %c0_i32 = arith.constant 0 : i32
    %c0_i32_0 = arith.constant 0 : i32
    %c0_i32_1 = arith.constant 0 : i32
    return %arg0, %c0_i32, %c0_i32_0 : i32, i32, i32
  }
  func.func @transform_1(%arg0: i32, %arg1: i32) -> (i32, i32, i32) {
    %c0_i32 = arith.constant 0 : i32
    %c0_i32_0 = arith.constant 0 : i32
    %c0_i32_1 = arith.constant 0 : i32
    return %arg1, %c0_i32, %c0_i32_0 : i32, i32, i32
  }
  func.func @transform_2(%arg0: i32, %arg1: i32) -> (i32, i32, i32) {
    %c0_i32 = arith.constant 0 : i32
    %c0_i32_0 = arith.constant 0 : i32
    %c0_i32_1 = arith.constant 0 : i32
    return %arg1, %c0_i32, %c0_i32_0 : i32, i32, i32
  }
  func.func @transform_3(%arg0: i32, %arg1: i32) -> (i32, i32, i32) {
    %c0_i32 = arith.constant 0 : i32
    %c0_i32_0 = arith.constant 0 : i32
    %c0_i32_1 = arith.constant 0 : i32
    return %arg1, %c0_i32, %c0_i32_0 : i32, i32, i32
  }
  func.func @transform_4(%arg0: i32, %arg1: i32) -> (i32, i32, i32) {
    %c0_i32 = arith.constant 0 : i32
    %c0_i32_0 = arith.constant 0 : i32
    %c0_i32_1 = arith.constant 0 : i32
    return %arg1, %c0_i32, %c0_i32_0 : i32, i32, i32
  }
  func.func @transform_5(%arg0: i32, %arg1: i32) -> (i32, i32, i32) {
    %c0_i32 = arith.constant 0 : i32
    %c0_i32_0 = arith.constant 0 : i32
    %c0_i32_1 = arith.constant 0 : i32
    return %arg1, %c0_i32, %c0_i32_0 : i32, i32, i32
  }
  func.func @transform_6(%arg0: i32, %arg1: i32) -> (i32, i32, i32) {
    %c0_i32 = arith.constant 0 : i32
    %c0_i32_0 = arith.constant 0 : i32
    %c0_i32_1 = arith.constant 0 : i32
    return %arg1, %c0_i32, %c0_i32_0 : i32, i32, i32
  }
  func.func @transform_7(%arg0: i32, %arg1: i32) -> (i32, i32, i32) {
    %c0_i32 = arith.constant 0 : i32
    %c0_i32_0 = arith.constant 0 : i32
    %c0_i32_1 = arith.constant 0 : i32
    return %arg1, %c0_i32, %c0_i32_0 : i32, i32, i32
  }
  func.func @transform_8(%arg0: i32, %arg1: i32) -> (i32, i32, i32) {
    %c0_i32 = arith.constant 0 : i32
    %c0_i32_0 = arith.constant 0 : i32
    %c0_i32_1 = arith.constant 0 : i32
    return %arg1, %c0_i32, %c0_i32_0 : i32, i32, i32
  }
  func.func @transform_9(%arg0: i32, %arg1: i32) -> (i32, i32, i32) {
    %c0_i32 = arith.constant 0 : i32
    %c0_i32_0 = arith.constant 0 : i32
    %c0_i32_1 = arith.constant 0 : i32
    return %arg1, %c0_i32, %c0_i32_0 : i32, i32, i32
  }
  func.func @transform_10(%arg0: i32, %arg1: i32) -> (i32, i32, i32) {
    %c0_i32 = arith.constant 0 : i32
    %c0_i32_0 = arith.constant 0 : i32
    %c0_i32_1 = arith.constant 0 : i32
    return %arg1, %c0_i32, %c0_i32_0 : i32, i32, i32
  }
  func.func @transform_11(%arg0: i32, %arg1: i32) -> (i32, i32, i32) {
    %c0_i32 = arith.constant 0 : i32
    %c0_i32_0 = arith.constant 0 : i32
    %c0_i32_1 = arith.constant 0 : i32
    return %arg1, %c0_i32, %c0_i32_0 : i32, i32, i32
  }
  func.func @transform_12(%arg0: i32, %arg1: i32) -> (i32, i32, i32) {
    %c0_i32 = arith.constant 0 : i32
    %c0_i32_0 = arith.constant 0 : i32
    %c0_i32_1 = arith.constant 0 : i32
    return %arg1, %c0_i32, %c0_i32_0 : i32, i32, i32
  }
  func.func @transform_13(%arg0: i32, %arg1: i32) -> (i32, i32, i32) {
    %c0_i32 = arith.constant 0 : i32
    %c0_i32_0 = arith.constant 0 : i32
    %c0_i32_1 = arith.constant 0 : i32
    return %arg1, %c0_i32, %c0_i32_0 : i32, i32, i32
  }
  func.func @transform_14(%arg0: i32, %arg1: i32) -> (i32, i32, i32) {
    %c0_i32 = arith.constant 0 : i32
    %c0_i32_0 = arith.constant 0 : i32
    %c0_i32_1 = arith.constant 0 : i32
    return %arg0, %c0_i32, %c0_i32_0 : i32, i32, i32
  }
}

</mosaic_0001>

<bundles_post_ra>
// kernel: tpu_custom_call.1
= control target key start
LH: loop header
LB: loop body
LE: loop exit
PB: predicated region body
PF: predicated region fallthrough
CT: control target
= control target key end

     0   :  { %s3836_s0 = inlined_call_operand.hbm [shape: f32[2,8,32], index: 0, kind: input, shape index: {}]   ;;  %s3837_s1 = inlined_call_operand.hbm [shape: f32[2,1,32], index: 1, kind: input, shape index: {}]   ;;  %s3838_s2 = inlined_call_operand.vmem [shape: f32[2,1,32], index: 2, kind: input, shape index: {}]   ;;  %s3839_s3 = inlined_call_operand.vmem [shape: bf16[2,32,32], index: 3, kind: input, shape index: {}]   ;;  %s3840_s4 = inlined_call_operand.vmem [shape: bf16[2,32,32], index: 4, kind: input, shape index: {}]   ;;  %s3841_s5 = inlined_call_operand.vmem [shape: bf16[2,32,32], index: 5, kind: input, shape index: {}]   ;;  %s3842_s6 = inlined_call_operand.hbm [shape: bf16[2,32,32], index: 6, kind: input, shape index: {}]   ;;  %s3843_s7 = inlined_call_operand.vmem [shape: f32[2,1,32], index: 7, kind: input, shape index: {}]   ;;  %s3844_s8 = inlined_call_operand.vmem [shape: f32[2,1,32], index: 8, kind: input, shape index: {}]   ;;  %s3845_s9 = inlined_call_operand.vmem [shape: f32[2,1,32], index: 9, kind: input, shape index: {}]   ;;  %s3846_s10 = inlined_call_operand.hbm [shape: bf16[2,32,64], index: 10, kind: input, shape index: {}]   ;;  %s3847_s11 = inlined_call_operand.vmem [shape: f32[2,1,64], index: 11, kind: input, shape index: {}]   ;;  %s3848_s12 = inlined_call_operand.vmem [shape: bf16[2,64,32], index: 12, kind: input, shape index: {}]   ;;  %s3849_s13 = inlined_call_operand.vmem [shape: f32[2,1,32], index: 13, kind: input, shape index: {}]   ;;  %s3850_s14 = inlined_call_operand.hbm [shape: f32[2,8,32], index: 14, kind: output, shape index: {}]  }
   0x1   :  { %3874 = sst [smem:[#allocation33_spill]] %s3836_s0 }
   0x2   :  { %3875 = sst [smem:[#allocation34_spill]] %s3837_s1 }
   0x3   :  { %3876 = sst [smem:[#allocation35_spill]] %s3838_s2 }
   0x4   :  { %3877 = sst [smem:[#allocation36_spill]] %s3839_s3 }
   0x5   :  { %3878 = sst [smem:[#allocation37_spill]] %s3840_s4 }
   0x6   :  { %3879 = sst [smem:[#allocation38_spill]] %s3841_s5 }
   0x7   :  { %3880 = sst [smem:[#allocation39_spill]] %s3842_s6 }
   0x8   :  { %3881 = sst [smem:[#allocation40_spill]] %s3843_s7 }
   0x9   :  { %3882 = sst [smem:[#allocation41_spill]] %s3844_s8 }
   0xa   :  { %3883 = sst [smem:[#allocation42_spill]] %s3845_s9 }
   0xb   :  { %3884 = sst [smem:[#allocation43_spill]] %s3846_s10 }
   0xc   :  { %3885 = sst [smem:[#allocation44_spill]] %s3847_s11 }
   0xd   :  { %3886 = sst [smem:[#allocation45_spill]] %s3848_s12 }
   0xe   :  { %3887 = sst [smem:[#allocation46_spill]] %s3849_s13 }
   0xf   :  { %3888 = sst [smem:[#allocation47_spill]] %s3850_s14 }
  0x10   :  { %19 = vsyncpa [#allocation4], 0 }
  0x11   :  { %21 = vsyncpa [#allocation4 + $0x1], 0 }
  0x12   :  { %22 = vsyncpa [#allocation7], 0 }
  0x13   :  { %24 = vsyncpa [#allocation7 + $0x1], 0 }
  0x14   :  { %25 = vsyncpa [#allocation10], 0 }
  0x15   :  { %27 = vsyncpa [#allocation10 + $0x1], 0 }
  0x16   :  { %28 = vsyncpa [#allocation5], 0 }
  0x17   :  { %30 = vsyncpa [#allocation5 + $0x1], 0  ;;  %s3237_s29 = smov 0   ;;  %s3239_s30 = smov 0  }
  0x18   :  { %s3241_s15 = smov 0   ;;  %s3243_s16 = smov 0  }
  0x19   :  { %s3245_s17 = smov 0   ;;  %s3247_s18 = smov 0  }
  0x1a   :  { %s3249_s19 = smov 0   ;;  %s3251_s20 = smov 0  }
  0x1b   :  { %s3253_s21 = smov 0   ;;  %s3255_s22 = smov 0  }
  0x1c   :  { %s3257_s23 = smov 0  }
  0x1d LB: > { %3889 = sst [smem:[#allocation16_spill]] %s3107_s30  ;;  %s3291_s24 = sadd.s32 4294967295, %s3143_s23   ;;  %s3143_s23 = sphi %s3257_s23, %s36_s23   ;;  %s3139_s22 = sphi %s3255_s22, %s3966_s22   ;;  %s3135_s21 = sphi %s3253_s21, %s3965_s21   ;;  %s3131_s20 = sphi %s3251_s20, %s3964_s20   ;;  %s3127_s19 = sphi %s3249_s19, %s3963_s19   ;;  %s3123_s18 = sphi %s3247_s18, %s3962_s18   ;;  %s3119_s17 = sphi %s3245_s17, %s3961_s17   ;;  %s3115_s16 = sphi %s3243_s16, %s3960_s16   ;;  %s3111_s15 = sphi %s3241_s15, %s3959_s15   ;;  %s3107_s30 = sphi %s3239_s30, %s3958_s30   ;;  %s3103_s29 = sphi %s3237_s29, %s3957_s29  }
  0x1e   : > { %3890 = sst [smem:[#allocation17_spill]] %s3111_s15  ;;  %s45_s25 = sadd.s32 1, %s3135_s21 }
  0x1f   : > { %3891 = sst [smem:[#allocation18_spill]] %s3115_s16  ;;  %p3294_p0 = scmp.ge.s32.totalorder %s45_s25, 2 }
  0x20   : > { %3892 = sst [smem:[#allocation19_spill]] %s3119_s17  ;;  %p63_p1 = scmp.eq.s32.totalorder %s3143_s23, 0 }
  0x21   : > { %3893 = sst [smem:[#allocation20_spill]] %s3123_s18  ;;  %p69_p2 = scmp.eq.s32.totalorder %s3291_s24, 0 }
  0x22   : > { %3894 = sst [smem:[#allocation21_spill]] %s3127_s19  ;;  %s81_s27 = sadd.s32 1, %s3111_s15 }
  0x23   : > { %3895 = sst [smem:[#allocation22_spill]] %s3131_s20  ;;  %s3968_s25 = smov (%p3294_p0, %s45_s25), 0 }
  0x24   : > { %3896 = sst [smem:[#allocation23_spill]] %s3135_s21  ;;  %p88_p3 = scmp.ne.s32.totalorder %s3111_s15, %s3107_s30 }
  0x25   : > { %3897 = sst [smem:[#allocation24_spill]] %s3139_s22  ;;  %p94_p4 = scmp.ne.s32.totalorder %s3107_s30, %s3103_s29 }
  0x26   : > { %3898 = sst [smem:[#allocation25_spill]] %s3143_s23  ;;  %s78_s28 = ssub.s32 %s3135_s21, %s3968_s25 }
  0x27   : > { %3900 = sst [smem:[#allocation26_spill]] %s3968_s25  ;;  %p79_p5 = scmp.eq.s32.totalorder %s78_s28, 0 }
  0x28   : > { %p90_p6 = por %p88_p3, %p63_p1  ;;  %p3314_p7 = por %p94_p4, %p69_p2 }
  0x29   : > { %p3855_p8 = scmp.lt.s32.totalorder %s3143_s23, 4  ;;  %s474_s13 = sand.u32 1, %s3143_s23  }
  0x2a   : > { %s3901_s14 = scalar_select %p3314_p7, 1, 0 }
  0x2b   : > { %s3320_s20 = scalar_select %p79_p5, %s3111_s15, %s81_s27  }
  0x2c   : > { %3902 = sst [smem:[#allocation27_spill]] %s3901_s14  ;;  %s3324_s12 = sand.u32 1, %s3111_s15  }
  0x2d   : > { %3903 = sst [smem:[#allocation28_spill]] %s3320_s20  ;;  %s2529_s29 = sshll.u32 %s3135_s21, 4 }
  0x2e   : > { %s477_s11 = scalar_lea.vmem [#allocation6], %s3324_s12  ;;  %s3904_s1 = sld [smem:[#allocation34_spill]] }
  0x2f   : > { %s484_s25 = sshll.u32 %s477_s11, 4  ;;  %p3333_p9 = pnand %p3855_p8, %p90_p6  ;;  %s485_s25 = int_to_ptr.vmem [resolvable:$true] %s484_s25 }
  0x30   : > { %s3856_s27 = sshll.u32 %s3324_s12, 4  ;;  %s3341_s4 = scalar_lea.sflag [#allocation7], %s474_s13 }
  0x31   : > { %s525_s15 = scalar_lea.vmem [#allocation8], %s3856_s27  ;;  %p3854_p10 = pneg %p3333_p9 }
  0x32   : > { %s532_s5 = sshll.u32 %s525_s15, 4  ;;  %s2916_s11 = scalar_lea.vmem %s485_s25, 16  ;;  %s3351_s5 = int_to_ptr.vmem [resolvable:$true] %s532_s5 }
  0x33   : > { %p2917_p11 = scmp.ne.s32.totalorder %s485_s25, %s2916_s11  ;;  %s3145_s9 = smov [#allocation6]  }
  0x34   : > { %s482_s8 = scalar_lea.hbm %s3904_s1, %s2529_s29  ;;  %s2921_s29 = sshll.u32 %s3145_s9, 4  ;;  %s2922_s29 = int_to_ptr.vmem [resolvable:$false] %s2921_s29 }
  0x35   : > { %p2919_p12 = pnand %p2917_p11, %p3854_p10  ;;  %s2923_s28 = scalar_lea.vmem %s2922_s29, 32 }
  0x36   : > { %p2924_p3 = scmp.lt.s32.totalorder %s485_s25, %s2922_s29  ;;  %p2925_p4 = scmp.lt.s32.totalorder %s2923_s28, %s2916_s11 }
  0x37   : > { %p2920_p13 = pneg %p2919_p12 }
  0x38   : > { %p2926_p5 = por %p2925_p4, %p2924_p3 }
  0x3a   : > { %p2927_p6 = pnand %p2926_p5, %p2920_p13 }
  0x3c   : > { %2930 = shalt.err (!%p2927_p6)
}
  0x3d   : > { %2756 = dma.hbm_to_vmem [thread:$0]  (!%p3333_p9), %s482_s8, 16, %s485_s25, %s3341_s4  }
  0x3e   : > { %p2536_p11 = scmp.ge.s32.totalorder %s3143_s23, 1  ;;  %p599_p12 = scmp.lt.s32.totalorder %s3143_s23, 5 }
  0x3f   : > { %s2524_s15 = sadd.s32 4294967294, %s3143_s23   ;;  %s48_s11 = sadd.s32 1, %s3139_s22 }
  0x40   : > { %p3355_p13 = pnand %p2536_p11, %p599_p12  ;;  %s3970_s11 = smov (!%p3294_p0, %s48_s11), %s3139_s22 }
  0x41   : > { %s55_s9 = sadd.s32 1, %s3123_s18  ;;  %p62_p3 = scmp.ne.s32.totalorder %s3123_s18, %s3119_s17 }
  0x42   : > { %p50_p4 = scmp.ge.s32.totalorder %s3970_s11, 2  ;;  %p68_p5 = scmp.ne.s32.totalorder %s3119_s17, %s3115_s16 }
  0x43   : > { %p3371_p6 = por %p63_p1, %p62_p3  ;;  %p430_p11 = scmp.eq.s32.totalorder %s3291_s24, 3 }
  0x44   : > { %s3972_s11 = smov (%p50_p4, %s3970_s11), 0  ;;  %p3380_p12 = por %p69_p2, %p68_p5 }
  0x45   : > { %3908 = sst [smem:[#allocation29_spill]] %s3972_s11  ;;  %p3384_p0 = por %p430_p11, %p62_p3 }
  0x46   : > { %s52_s29 = ssub.s32 %s3139_s22, %s3972_s11  ;;  %p436_p1 = scmp.eq.s32.totalorder %s2524_s15, 3 }
  0x47   : > { %s3910_s26 = scalar_select %p3384_p0, 1, 0 }
  0x48   : > { %p53_p10 = scmp.eq.s32.totalorder %s52_s29, 0  ;;  %s456_s28 = sand.u32 1, %s3123_s18  }
  0x49   : > { %3911 = sst [smem:[#allocation30_spill]] %s3910_s26  ;;  %p3391_p8 = por %p436_p1, %p68_p5 }
  0x4a   : > { %s3396_s20 = scalar_select %p53_p10, %s3123_s18, %s55_s9  }
  0x4b   : > { %s3912_s27 = scalar_select %p3391_p8, 1, 0 }
  0x4c   : > { %3914 = sst [smem:[#allocation32_spill]] %s3396_s20  ;;  %s2527_s1 = sshll.u32 %s456_s28, 3 }
  0x4d   : > { %3913 = sst [smem:[#allocation31_spill]] %s3912_s27  ;;  %s2528_s16 = sshll.u32 %s3139_s22, 7 }
  0x4e   : > { %s3915_s0 = sld [smem:[#allocation33_spill]]  ;;  %s460_s14 = scalar_lea.vmem [#allocation3], %s2527_s1 }
  0x4f   : > { %s467_s30 = sshll.u32 %s460_s14, 4  ;;  %p3916_p2 = scmp.lt.s32.totalorder %s3143_s23, 4  ;;  %s468_s30 = int_to_ptr.vmem [resolvable:$true] %s467_s30 }
  0x50   : > { %s3918_s29 = sshll.u32 %s3135_s21, 8  ;;  %s3919_s6 = sld [smem:[#allocation39_spill]] }
  0x51   : > { %p3406_p3 = pnand %p3916_p2, %p3371_p6  ;;  %s457_s22 = scalar_lea.sflag [#allocation4], %s456_s28 }
  0x52   : > { %s2944_s2 = scalar_lea.vmem %s468_s30, 128  ;;  %s3146_s1 = smov [#allocation3]  }
  0x53   : > { %p2933_p10 = pneg %p3406_p3  ;;  %p2945_p4 = scmp.ne.s32.totalorder %s468_s30, %s2944_s2 }
  0x54   : > { %s465_s19 = scalar_lea.hbm %s3915_s0, %s2528_s16  ;;  %s2949_s3 = sshll.u32 %s3146_s1, 4  ;;  %s2950_s3 = int_to_ptr.vmem [resolvable:$false] %s2949_s3 }
  0x55   : > { %p2947_p5 = pnand %p2945_p4, %p2933_p10  ;;  %s2951_s14 = scalar_lea.vmem %s2950_s3, 256 }
  0x56   : > { %s3415_s20 = scalar_lea.hbm %s3919_s6, %s3918_s29  ;;  %p2952_p6 = scmp.lt.s32.totalorder %s468_s30, %s2950_s3 }
  0x57   : > { %p2948_p11 = pneg %p2947_p5  ;;  %p2953_p1 = scmp.lt.s32.totalorder %s2951_s14, %s2944_s2 }
  0x59   : > { %p2954_p2 = por %p2953_p1, %p2952_p6 }
  0x5b   : > { %p2955_p8 = pnand %p2954_p2, %p2948_p11 }
  0x5d   : > { %2958 = shalt.err (!%p2955_p8)
}
  0x5e   : > { %2753 = dma.hbm_to_vmem [thread:$0]  (!%p3406_p3), %s465_s19, 128, %s468_s30, %s457_s22  }
  0x5f   : > { %s2972_s16 = scalar_lea.vmem %s3351_s5, 256  ;;  %p3920_p10 = pneg %p3333_p9 }
  0x60   : > { %p2973_p0 = scmp.ne.s32.totalorder %s3351_s5, %s2972_s16  ;;  %s3147_s11 = smov [#allocation8]  }
  0x61   : > { %s2977_s8 = sshll.u32 %s3147_s11, 4  ;;  %s2978_s8 = int_to_ptr.vmem [resolvable:$false] %s2977_s8 }
  0x62   : > { %p2975_p4 = pnand %p2973_p0, %p3920_p10  ;;  %s2979_s28 = scalar_lea.vmem %s2978_s8, 512 }
  0x63   : > { %p2980_p6 = scmp.lt.s32.totalorder %s3351_s5, %s2978_s8  ;;  %p2981_p11 = scmp.lt.s32.totalorder %s2979_s28, %s2972_s16 }
  0x64   : > { %p2976_p5 = pneg %p2975_p4 }
  0x65   : > { %p2982_p8 = por %p2981_p11, %p2980_p6 }
  0x67   : > { %p2983_p1 = pnand %p2982_p8, %p2976_p5 }
  0x69   : > { %2986 = shalt.err (!%p2983_p1)
}
  0x6a   : > { %s3148_s15 = smov 64   ;;  %s3149_s30 = smov 4  }
  0x6b   : > { %2759 = dma.hbm_to_vmem [thread:$0]  (!%p3333_p9), %s3415_s20, 256, %s3351_s5, %s3341_s4, %s3148_s15, %s3148_s15, %s3149_s30  }
  0x6c   : > { %s3921_s19 = smov %s3918_s29  ;;  %s3922_s10 = sld [smem:[#allocation43_spill]] }
  0x6d   : > { %s3923_s2 = sshll.u32 %s3324_s12, 4  ;;  %s561_s14 = scalar_lea.sflag [#allocation10], %s3324_s12 }
  0x6e   : > { %s564_s1 = scalar_lea.vmem [#allocation9], %s3923_s2  ;;  %p3924_p3 = pmov %p3920_p10 }
  0x6f   : > { %s571_s3 = sshll.u32 %s564_s1, 4  ;;  %s3150_s11 = smov [#allocation9]   ;;  %s572_s3 = int_to_ptr.vmem [resolvable:$true] %s571_s3 }
  0x70   : > { %s3000_s16 = scalar_lea.vmem %s572_s3, 256  ;;  %s3005_s8 = sshll.u32 %s3150_s11, 4  ;;  %s3006_s8 = int_to_ptr.vmem [resolvable:$false] %s3005_s8 }
  0x71   : > { %p3001_p0 = scmp.ne.s32.totalorder %s572_s3, %s3000_s16  ;;  %s3007_s4 = scalar_lea.vmem %s3006_s8, 512 }
  0x72   : > { %s570_s9 = scalar_lea.hbm %s3922_s10, %s3921_s19  ;;  %p3008_p4 = scmp.lt.s32.totalorder %s572_s3, %s3006_s8 }
  0x73   : > { %p3003_p2 = pnand %p3001_p0, %p3924_p3  ;;  %p3009_p5 = scmp.lt.s32.totalorder %s3007_s4, %s3000_s16 }
  0x75   : > { %p3004_p10 = pneg %p3003_p2  ;;  %p3010_p6 = por %p3009_p5, %p3008_p4 }
  0x77   : > { %p3011_p11 = pnand %p3010_p6, %p3004_p10 }
  0x79   : > { %3014 = shalt.err (!%p3011_p11)
}
  0x7a   : > { %2762 = dma.hbm_to_vmem [thread:$0]  (!%p3333_p9), %s570_s9, 256, %s572_s3, %s561_s14, %s3148_s15, %s3148_s15, %s3149_s30  }
  0x7b   : > { %603 = sbr.rel (%p3355_p13) target bundleno = 2653 (0xa5d), region = 76  ;;  %s3448_s5 = sand.u32 (!%p3355_p13), 1, %s3119_s17  }
  0x7c   : > { %s3865_s12 = sshll.u32 (!%p3355_p13), %s3448_s5, 3  ;;  %s606_s20 = scalar_lea.sflag (!%p3355_p13), [#allocation4], %s3448_s5 }
  0x7d   : > { %s3454_s28 = scalar_lea.vmem (!%p3355_p13), [#allocation3], %s3865_s12 }
  0x80   : > { %3086 = dma.done.wait (%p3380_p12), %s606_s20, 128  }
  0x81   : > { %3088 = vsyncadd (%p3380_p12), %s606_s20, 4294967168  ;;  %s3925_s7 = sld [smem:[#allocation16_spill]]  ;;  %s614_s15 = sand.u32 1, %s3291_s24  }
  0x82   : > { %s615_s19 = scalar_lea.sflag [#allocation7], %s614_s15 }
  0x87   : > { %s3462_s30 = sand.u32 1, %s3925_s7  }
  0x88   : > { %3090 = dma.done.wait (%p3314_p7), %s615_s19, 272  }
  0x89   : > { %3092 = vsyncadd (%p3314_p7), %s615_s19, 4294967024  ;;  %s2538_s29 = sshll.u32 %s3462_s30, 4  ;;  %s632_s9 = scalar_lea.sflag [#allocation10], %s3462_s30 }
  0x8a   : > { %s3470_s25 = scalar_lea.vmem [#allocation8], %s2538_s29  ;;  %s3473_s2 = scalar_lea.vmem [#allocation9], %s2538_s29 }
  0x8b   : > { %3094 = dma.done.wait (%p3314_p7), %s632_s9, 256  }
  0x8c   : > { %3096 = vsyncadd (%p3314_p7), %s632_s9, 4294967040  ;;  %s3927_s24 = sld [smem:[#allocation21_spill]]  ;;  %s3938_s21 = sshll.u32 %s3448_s5, 3 }
  0x8d   : > { %s3929_s7 = sld [smem:[#allocation36_spill]] }
  0x8e   : > { %s3930_s29 = sld [smem:[#allocation37_spill]] }
  0x8f   : > { %s3931_s22 = sld [smem:[#allocation38_spill]] }
  0x90   : > { %s3933_s18 = sld [smem:[#allocation41_spill]] }
  0x91   : > { %s3934_s17 = sld [smem:[#allocation42_spill]] }
  0x92   : > { %p732_p9 = scmp.lt.s32.totalorder %s3927_s24, 1  ;;  %s3937_s10 = sld [smem:[#allocation46_spill]] }
  0x93   : > { %p2549_p7 = scmp.ne.s32.totalorder %s3927_s24, 0 }
  0x94   : > { %s3481_s1 = scalar_select %p732_p9, %s3927_s24, 1 }
  0x96   : > { %s2600_s8 = sshll.u32 %s3481_s1, 4  ;;  %s755_s4 = scalar_lea.vmem %s3933_s18, %s3481_s1 }
  0x97   : > { %s3491_s13 = scalar_lea.vmem %s3929_s7, %s2600_s8  ;;  %s3496_s9 = scalar_lea.vmem %s3930_s29, %s2600_s8 }
  0x98   : > { %s3501_s12 = scalar_lea.vmem %s3931_s22, %s2600_s8  ;;  %s758_s27 = scalar_lea.vmem %s3934_s17, %s3481_s1 }
  0x99   : > { %s3935_s29 = sld [smem:[#allocation44_spill]]  ;;  %s2603_s26 = sshll.u32 %s3481_s1, 5 }
  0x9a   : > { %s3936_s8 = sld [smem:[#allocation45_spill]]  ;;  %s769_s16 = scalar_lea.vmem %s3937_s10, %s3481_s1 }
  0x9b   : > { %s3531_s18 = scalar_lea.vmem [#allocation11], %s3938_s21 }
  0x9c   : > { %774 = sbr.rel (%p2549_p7) target bundleno = 163 (0xa3), region = 96 }
  0x9f   : > { %s761_s23 = scalar_lea.vmem %s3935_s29, %s3481_s1 }
  0xa0   : > { %s3523_s14 = scalar_lea.vmem %s3936_s8, %s2603_s26 }
  0xa1   : > { %v775_v0 = vld [vmem:[%s3454_s28] sm:$0xff]  ;;  %vm776_vm0 = vcmask 261120  }
  0xa2   : > { %777 = vst.msk [vmem:[#allocation2] sm:$0xff] %vm776_vm0, %v775_v0 }
  0xa3 PF: > { %vm781_vm1 = vcmask 261120   ;;  %v2869_v8 = vld [vmem:[%s3491_s13 + $0x8] sm:$0xff]   ;;  %v3151_v10 = vmov 0.0   ;;  %v2871_v11 = vld [vmem:[%s3491_s13] sm:$0xff]   ;;  %vm3152_vm2 = vmmov 0   ;;  %s3939_s17 = scalar_lea.vmem [#allocation6], %s3462_s30  ;;  %v997_v39 = vlaneseq }
  0xa4   : > { %v2870_v9 = vld [vmem:[%s3496_s9 + $0x8] sm:$0xff]   ;;  %2640 = vmatprep.subr.bf16.mxu0 %v3151_v10  ;;  %2648 = vmatprep.subr.bf16.mxu1 %v3151_v10  ;;  %v2872_v12 = vld [vmem:[%s3496_s9] sm:$0xff]   ;;  %s3940_s24 = sld [smem:[#allocation35_spill]]  ;;  %s3154_s30 = smov 120   ;;  %v3156_v37 = vmov 1983009808  }
  0xa5   : > { %2641 = vmatpush3.bf16.msra.mxu0 %v2869_v8  ;;  %2649 = vmatpush3.bf16.msra.mxu1 %v2870_v9  ;;  %v2550_v17 = vld [vmem:[%s3939_s17] ss:$0 sm:$0xff]  ;;  %v2873_v22 = vld [vmem:[%s3501_s12 + $0x8] sm:$0xff]   ;;  %s3155_s13 = smov 112   ;;  %v995_v38 = vunpack.c.l.s4 %v3156_v37  ;;  %v3157_v40 = vmov 1934713408  }
  0xa6   : > { %2642 = vmatprep.subr.bf16.mxu0 %v3151_v10  ;;  %2650 = vmatprep.subr.bf16.mxu1 %v3151_v10  ;;  %v2874_v24 = vld [vmem:[%s3501_s12] sm:$0xff]   ;;  %s3153_s12 = smov 104   ;;  %v1027_v41 = vunpack.c.l.s4 %v3157_v40  ;;  %v998_v43 = vshrl.u32 %v997_v39, 7  ;;  %vm1432_vm3 = vcmask 64512   ;;  %vm1672_vm4 = vcmask 1043456   ;;  %s3159_s9 = smov 8  }
  0xa7   : > { %2644 = vmatprep.mubr.msk.bf16.mxu0 %vm3152_vm2, %v3151_v10  ;;  %2652 = vmatprep.mubr.msk.bf16.mxu1 %vm3152_vm2, %v3151_v10  ;;  %v996_v42 = vunpack.c.0.s8 %v995_v38  ;;  %s3160_s20 = smov 24   ;;  %vm2003_vm5 = vcmask 130048   ;;  %vm2005_vm6 = vcmask 195584   ;;  %s3942_s19 = sld [smem:[#allocation40_spill]]  ;;  %vm2212_vm7 = vcmask 523264  }
  0xa8   : > { %v1028_v46 = vunpack.c.0.s8 %v1027_v41 }
  0xa9   : > { %v3535_v1 = vld [vmem:[#allocation2] sm:$0xff]  ;;  %2643 = vmatpush3.bf16.msra.mxu0 %v2871_v11  ;;  %2651 = vmatpush3.bf16.msra.mxu1 %v2872_v12  ;;  %v3588_v47 = vsub.s32 %v996_v42, %v998_v43 }
  0xaa   : > { %v782_v2 = vsel %vm781_vm1, %v3535_v1, 0.0  ;;  %2656 = vmatprep.subr.bf16.mxu0 %v3151_v10  ;;  %2664 = vmatprep.subr.bf16.mxu1 %v3151_v10  ;;  %s3941_s11 = scalar_lea.vmem %s3940_s24, %s3481_s1  ;;  %v3590_v53 = vsub.s32 %v1028_v46, %v998_v43 }
  0xab   : > { %783 = vadd.xlane.f32.xlu0 %v782_v2  ;;  %v2551_v19 = vld [vmem:[%s3941_s11] ss:$0 sm:$0xff] }
  0xad   : > { %s3943_s29 = scalar_lea.vmem %s3942_s19, %s3481_s1 }
 0x134   : > { %v784_v3 = vpop.xlane.xlu0 %783 }
 0x135   : > { %v786_v4 = vmul.f32 0.03125, %v784_v3 }
 0x137   : > { %v787_v5 = vsub.f32 %v3535_v1, %v786_v4 }
 0x139   : > { %v788_v6 = vmul.f32 %v787_v5, %v787_v5 }
 0x13b   : > { %v789_v7 = vsel %vm781_vm1, %v788_v6, 0.0 }
 0x13c   : > { %790 = vadd.xlane.f32.xlu0 %v789_v7 }
 0x1c5   : > { %v791_v13 = vpop.xlane.xlu0 %790 }
 0x1c6   : > { %v792_v14 = vmul.f32 0.03125, %v791_v13 }
 0x1c8   : > { %v793_v15 = vadd.f32 1e-05, %v792_v14 }
 0x1ca   : > { %2883 = vrsqrt.f32 %v793_v15 }
 0x1d7   : > { %v2884_v16 = vpop.eup %2883 }
 0x1d8   : > { %v795_v18 = vmul.f32 %v2884_v16, %v787_v5 }
 0x1da   : > { %v802_v20 = vmul.f32 %v2550_v17, %v795_v18 }
 0x1dc   : > { %v809_v21 = vadd.f32 %v2551_v19, %v802_v20 }
 0x1de   : > { %v810_v23 = vpack.c.bf16 %v809_v21, %v809_v21 }
 0x1e0   : > { %2645 = vmatmul.mubr.msk.bf16.vlgmr.msra.gmra.mxu0 %vm781_vm1, %v810_v23  ;;  %2653 = vmatmul.mubr.msk.bf16.vlgmr.msra.gmra.mxu1 %vm781_vm1, %v810_v23 }
 0x1e1   : > { %2657 = vmatpush3.bf16.msra.mxu0 %v2873_v22  ;;  %2660 = vmatprep.mubr.msk.bf16.mxu0 %vm3152_vm2, %v3151_v10 }
 0x1e2   : > { %2658 = vmatprep.subr.bf16.mxu0 %v3151_v10  ;;  %2666 = vmatprep.mubr.msk.bf16.mxu1 %vm3152_vm2, %v3151_v10 }
 0x1e5   : > { %2659 = vmatpush3.bf16.msra.mxu0 %v2874_v24 }
 0x1e6   : > { %2670 = vmatprep.subr.bf16.mxu0 %v3151_v10 }
 0x1e8   : > { %2661 = vmatmul.mubr.msk.bf16.vlgmr.msra.gmra.mxu0 %vm781_vm1, %v810_v23 }
 0x1e9   : > { %2672 = vmatprep.mubr.msk.bf16.mxu0 %vm3152_vm2, %v3151_v10 }
 0x2a0   : > { %v3575_v25 = vpop.f32.mrf.mxu0  ;;  %v920_v26 = vpop.f32.mrf.mxu1 }
 0x2a1   : > { %1139 = vrot.lane.b32.xlu0 %v920_v26, %s3153_s12  ;;  %1133 = vrot.lane.b32.xlu1 %v920_v26, %s3154_s30 }
 0x2a2   : > { %v2646_v27 = vpop.f32.mrf.mxu0  ;;  %v2654_v28 = vpop.f32.mrf.mxu1 }
 0x2a4   : > { %v867_v29 = vpop.f32.mrf.mxu0  ;;  %v923_v30 = vpop.f32.mrf.mxu1 }
 0x2a5   : > { %1136 = vrot.lane.b32.xlu1 %v920_v26, %s3155_s13 }
 0x2a6   : > { %v2647_v31 = vpop.f32.mrf.mxu0  ;;  %v2655_v32 = vpop.f32.mrf.mxu1 }
 0x2a8   : > { %v3580_v33 = vpop.f32.mrf.mxu0 }
 0x2a9   : > { %983 = vrot.lane.b32.xlu1 %v3575_v25, %s3154_s30 }
 0x2aa   : > { %v2662_v34 = vpop.f32.mrf.mxu0 }
 0x2ac   : > { %v979_v35 = vpop.f32.mrf.mxu0 }
 0x2ad   : > { %986 = vrot.lane.b32.xlu1 %v3575_v25, %s3155_s13 }
 0x2ae   : > { %v2663_v36 = vpop.f32.mrf.mxu0 }
 0x2b1   : > { %989 = vrot.lane.b32.xlu1 %v3575_v25, %s3153_s12 }
 0x313   : > { %v1140_v44 = vpop.permute.xlu0 %1139  ;;  %v1134_v45 = vpop.permute.xlu1 %1133 }
 0x314   : > { %v1158_v48 = vcombine.low %v1134_v45, %v1140_v44  ;;  %v1159_v49 = vcombine.high %v1134_v45, %v1140_v44 }
 0x316   : > { %v1166_v54 = vrot.slane %v1158_v48, %v3588_v47  ;;  %v1173_v55 = vrot.slane %v1159_v49, %v3588_v47 }
 0x317   : > { %v1137_v50 = vpop.permute.xlu1 %1136 }
 0x318   : > { %v1142_v51 = vcombine.low %v920_v26, %v1137_v50  ;;  %v1143_v52 = vcombine.high %v920_v26, %v1137_v50 }
 0x31a   : > { %v1150_v56 = vrot.slane %v1142_v51, %v3588_v47  ;;  %v1157_v57 = vrot.slane %v1143_v52, %v3588_v47 }
 0x31b   : > { %v984_v58 = vpop.permute.xlu1 %983 }
 0x31c   : > { %v1174_v59 = vcombine.low %v1150_v56, %v1166_v54  ;;  %v1175_v60 = vcombine.high %v1150_v56, %v1166_v54  ;;  %v1190_v61 = vcombine.low %v1157_v57, %v1173_v55  ;;  %v1191_v62 = vcombine.high %v1157_v57, %v1173_v55 }
 0x31e   : > { %v1182_v63 = vrot.slane %v1174_v59, %v3590_v53  ;;  %v1189_v0 = vrot.slane %v1175_v60, %v3590_v53  ;;  %v1198_v2 = vrot.slane %v1190_v61, %v3590_v53  ;;  %v1205_v3 = vrot.slane %v1191_v62, %v3590_v53 }
 0x31f   : > { %v987_v4 = vpop.permute.xlu1 %986 }
 0x320   : > { %v1210_v5 = vcombine.low %v1182_v63, %v1189_v0  ;;  %v2563_v6 = vcombine.high %v1182_v63, %v1189_v0  ;;  %v1226_v7 = vcombine.low %v1198_v2, %v1205_v3  ;;  %v2564_v8 = vcombine.high %v1198_v2, %v1205_v3 }
 0x321   : > { %v992_v9 = vcombine.low %v3575_v25, %v987_v4  ;;  %v993_v11 = vcombine.high %v3575_v25, %v987_v4 }
 0x322   : > { %v1217_v12 = vrot.slane %v1210_v5, %v3588_v47  ;;  %v1225_v13 = vrot.slane %v2563_v6, %v3588_v47  ;;  %v1233_v14 = vrot.slane %v1226_v7, %v3588_v47  ;;  %v1241_v15 = vrot.slane %v2564_v8, %v3588_v47 }
 0x323   : > { %v990_v16 = vpop.permute.xlu1 %989  ;;  %v1000_v21 = vrot.slane %v992_v9, %v3588_v47  ;;  %v1007_v22 = vrot.slane %v993_v11, %v3588_v47 }
 0x324   : > { %v1008_v17 = vcombine.low %v984_v58, %v990_v16  ;;  %v1009_v18 = vcombine.high %v984_v58, %v990_v16  ;;  %v1242_v19 = vcombine.low %v1217_v12, %v1225_v13  ;;  %v1258_v20 = vcombine.low %v1233_v14, %v1241_v15 }
 0x325   : > { %v1243_v27 = vcombine.high %v1217_v12, %v1225_v13  ;;  %v1259_v28 = vcombine.high %v1233_v14, %v1241_v15 }
 0x326   : > { %v1016_v23 = vrot.slane %v1008_v17, %v3588_v47  ;;  %v1023_v24 = vrot.slane %v1009_v18, %v3588_v47  ;;  %v1250_v25 = vrot.slane %v1242_v19, %v3590_v53  ;;  %v1266_v26 = vrot.slane %v1258_v20, %v3590_v53 }
 0x327   : > { %v1257_v42 = vrot.slane %v1243_v27, %v3590_v53  ;;  %v1273_v43 = vrot.slane %v1259_v28, %v3590_v53 }
 0x328   : > { %v1024_v29 = vcombine.low %v1000_v21, %v1016_v23  ;;  %v1025_v30 = vcombine.high %v1000_v21, %v1016_v23  ;;  %v1040_v31 = vcombine.low %v1007_v22, %v1023_v24  ;;  %v1041_v32 = vcombine.high %v1007_v22, %v1023_v24 }
 0x329   : > { %v1274_v34 = vcombine.low %v1250_v25, %v1266_v26  ;;  %v1275_v35 = vcombine.high %v1250_v25, %v1266_v26  ;;  %v1276_v58 = vcombine.low %v1257_v42, %v1273_v43  ;;  %v1277_v59 = vcombine.high %v1257_v42, %v1273_v43 }
 0x32a   : > { %v1032_v36 = vrot.slane %v1024_v29, %v3590_v53  ;;  %v1039_v37 = vrot.slane %v1025_v30, %v3590_v53  ;;  %v1048_v38 = vrot.slane %v1040_v31, %v3590_v53  ;;  %v1055_v39 = vrot.slane %v1041_v32, %v3590_v53 }
 0x32b   : > { %v1278_v40 = vpack.c.bf16 %v1274_v34, %v1274_v34  ;;  %v1279_v41 = vpack.c.bf16 %v1275_v35, %v1275_v35  ;;  %v1280_v3 = vpack.c.bf16 %v1276_v58, %v1276_v58  ;;  %v1281_v4 = vpack.c.bf16 %v1277_v59, %v1277_v59 }
 0x32c   : > { %v1060_v44 = vcombine.low %v1032_v36, %v1039_v37  ;;  %v2561_v45 = vcombine.high %v1032_v36, %v1039_v37  ;;  %v1076_v46 = vcombine.low %v1048_v38, %v1055_v39  ;;  %v2562_v48 = vcombine.high %v1048_v38, %v1055_v39 }
 0x32d   : > { %v1437_v49 = vsel %vm1432_vm3, %v1278_v40, 0  ;;  %v1483_v50 = vsel %vm1432_vm3, %v1279_v41, 0  ;;  %v1529_v9 = vsel %vm1432_vm3, %v1280_v3, 0  ;;  %v1575_v11 = vsel %vm1432_vm3, %v1281_v4, 0 }
 0x32e   : > { %v1067_v51 = vrot.slane %v1060_v44, %v3588_v47  ;;  %v1075_v52 = vrot.slane %v2561_v45, %v3588_v47  ;;  %v1083_v54 = vrot.slane %v1076_v46, %v3588_v47  ;;  %v1091_v55 = vrot.slane %v2562_v48, %v3588_v47  ;;  %2665 = vmatpush3.bf16.xpose.msra.mxu1 %v1437_v49 }
 0x32f   : > { %2671 = vmatpush3.bf16.xpose.msra.mxu0 %v1483_v50  ;;  %2676 = vmatprep.subr.bf16.mxu1 %v3151_v10 }
 0x330   : > { %v1092_v56 = vcombine.low %v1067_v51, %v1075_v52  ;;  %v1108_v57 = vcombine.low %v1083_v54, %v1091_v55  ;;  %2682 = vmatprep.subr.bf16.mxu0 %v3151_v10  ;;  %v1093_v60 = vcombine.high %v1067_v51, %v1075_v52  ;;  %v1109_v61 = vcombine.high %v1083_v54, %v1091_v55 }
 0x332   : > { %v1100_v62 = vrot.slane %v1092_v56, %v3590_v53  ;;  %v1116_v63 = vrot.slane %v1108_v57, %v3590_v53  ;;  %v1107_v7 = vrot.slane %v1093_v60, %v3590_v53  ;;  %v1123_v8 = vrot.slane %v1109_v61, %v3590_v53 }
 0x334   : > { %v1124_v0 = vcombine.low %v1100_v62, %v1116_v63  ;;  %v1125_v2 = vcombine.high %v1100_v62, %v1116_v63  ;;  %v1126_v12 = vcombine.low %v1107_v7, %v1123_v8  ;;  %v1127_v13 = vcombine.high %v1107_v7, %v1123_v8 }
 0x336   : > { %v1128_v5 = vpack.c.bf16 %v1124_v0, %v1124_v0  ;;  %v1129_v6 = vpack.c.bf16 %v1125_v2, %v1125_v2  ;;  %v1130_v14 = vpack.c.bf16 %v1126_v12, %v1126_v12  ;;  %v1131_v15 = vpack.c.bf16 %v1127_v13, %v1127_v13 }
 0x338   : > { %2667 = vmatmul.mubr.msk.bf16.vlgmr.msra.gmra.mxu1 %vm1432_vm3, %v1128_v5  ;;  %2673 = vmatmul.mubr.msk.bf16.vlgmr.msra.gmra.mxu0 %vm1432_vm3, %v1129_v6 }
 0x339   : > { %2677 = vmatpush3.bf16.xpose.msra.mxu1 %v1529_v9  ;;  %2683 = vmatpush3.bf16.xpose.msra.mxu0 %v1575_v11 }
 0x33a   : > { %2678 = vmatprep.mubr.msk.bf16.mxu1 %vm3152_vm2, %v3151_v10  ;;  %2684 = vmatprep.mubr.msk.bf16.mxu0 %vm3152_vm2, %v3151_v10 }
 0x33b   : > { %2688 = vmatprep.subr.bf16.mxu1 %v3151_v10  ;;  %2694 = vmatprep.subr.bf16.mxu0 %v3151_v10 }
 0x340   : > { %2679 = vmatmul.mubr.msk.bf16.vlgmr.msra.gmra.mxu1 %vm1432_vm3, %v1130_v14  ;;  %2685 = vmatmul.mubr.msk.bf16.vlgmr.msra.gmra.mxu0 %vm1432_vm3, %v1131_v15 }
 0x341   : > { %2690 = vmatprep.mubr.msk.bf16.mxu1 %vm3152_vm2, %v3151_v10  ;;  %2696 = vmatprep.mubr.msk.bf16.mxu0 %vm3152_vm2, %v3151_v10 }
 0x3f8   : > { %v1473_v16 = vpop.f32.mrf.mxu1  ;;  %v1519_v17 = vpop.f32.mrf.mxu0 }
 0x3f9   : > { %v1617_v18 = vmul.f32 0.35355338, %v1473_v16  ;;  %v1618_v19 = vmul.f32 0.35355338, %v1519_v17 }
 0x3fa   : > { %v2668_v20 = vpop.f32.mrf.mxu1  ;;  %v2674_v21 = vpop.f32.mrf.mxu0 }
 0x3fb   : > { %v1621_v22 = vsel %vm1432_vm3, %v1617_v18, -inf  ;;  %v1624_v23 = vsel %vm1432_vm3, %v1618_v19, -inf }
 0x3fc   : > { %1622 = vmax.xlane.f32.xlu1 %v1621_v22  ;;  %v1476_v24 = vpop.f32.mrf.mxu1  ;;  %1625 = vmax.xlane.f32.xlu0 %v1624_v23  ;;  %v1522_v25 = vpop.f32.mrf.mxu0 }
 0x3fe   : > { %v2669_v26 = vpop.f32.mrf.mxu1  ;;  %v2675_v27 = vpop.f32.mrf.mxu0 }
 0x400   : > { %v1565_v28 = vpop.f32.mrf.mxu1  ;;  %v1611_v29 = vpop.f32.mrf.mxu0 }
 0x401   : > { %v1619_v30 = vmul.f32 0.35355338, %v1565_v28  ;;  %v1620_v34 = vmul.f32 0.35355338, %v1611_v29 }
 0x402   : > { %v2680_v31 = vpop.f32.mrf.mxu1  ;;  %v2686_v32 = vpop.f32.mrf.mxu0 }
 0x403   : > { %v1627_v35 = vsel %vm1432_vm3, %v1619_v30, -inf  ;;  %v1630_v40 = vsel %vm1432_vm3, %v1620_v34, -inf }
 0x404   : > { %1628 = vmax.xlane.f32.xlu1 %v1627_v35  ;;  %v1568_v36 = vpop.f32.mrf.mxu1  ;;  %v1614_v37 = vpop.f32.mrf.mxu0 }
 0x406   : > { %v2681_v38 = vpop.f32.mrf.mxu1  ;;  %v2687_v39 = vpop.f32.mrf.mxu0 }
 0x408   : > { %1631 = vmax.xlane.f32.xlu1 %v1630_v40 }
 0x419   : > { %1286 = vrot.lane.b32.xlu1 %v3580_v33, %s3155_s13 }
 0x485   : > { %v1623_v41 = vpop.xlane.xlu1 %1622  ;;  %v1626_v42 = vpop.xlane.xlu0 %1625 }
 0x486   : > { %v1633_v43 = vsub.f32 %v1617_v18, %v1623_v41  ;;  %v1634_v44 = vsub.f32 %v1618_v19, %v1626_v42 }
 0x488   : > { %v1637_v45 = vmul.f32 1.442695, %v1633_v43  ;;  %v1639_v46 = vmul.f32 1.442695, %v1634_v44 }
 0x48a   : > { %2885 = vpow2.f32 %v1637_v45 }
 0x48b   : > { %2887 = vpow2.f32 %v1639_v46 }
 0x48d   : > { %v1629_v52 = vpop.xlane.xlu1 %1628 }
 0x48e   : > { %v1635_v55 = vsub.f32 %v1619_v30, %v1629_v52 }
 0x490   : > { %v1641_v57 = vmul.f32 1.442695, %v1635_v55 }
 0x491   : > { %v1632_v54 = vpop.xlane.xlu1 %1631 }
 0x492   : > { %v1636_v56 = vsub.f32 %v1620_v34, %v1632_v54  ;;  %2889 = vpow2.f32 %v1641_v57 }
 0x494   : > { %v1643_v58 = vmul.f32 1.442695, %v1636_v56 }
 0x495   : > { %v1287_v63 = vpop.permute.xlu1 %1286 }
 0x496   : > { %2891 = vpow2.f32 %v1643_v58  ;;  %v1292_v3 = vcombine.low %v3580_v33, %v1287_v63  ;;  %v1293_v4 = vcombine.high %v3580_v33, %v1287_v63 }
 0x497   : > { %v3652_v48 = vpop.eup %2885 }
 0x498   : > { %v3654_v49 = vpop.eup %2887  ;;  %v1645_v50 = vsel %vm1432_vm3, %v3652_v48, 0.0  ;;  %v1300_v9 = vrot.slane %v1292_v3, %v3588_v47  ;;  %v1307_v11 = vrot.slane %v1293_v4, %v3588_v47 }
 0x499   : > { %1646 = vadd.xlane.f32.xlu0 %v1645_v50  ;;  %v1648_v51 = vsel %vm1432_vm3, %v3654_v49, 0.0 }
 0x49a   : > { %1649 = vadd.xlane.f32.xlu1 %v1648_v51 }
 0x49f   : > { %v3664_v59 = vpop.eup %2889 }
 0x4a0   : > { %v1651_v61 = vsel %vm1432_vm3, %v3664_v59, 0.0 }
 0x4a3   : > { %v3666_v60 = vpop.eup %2891 }
 0x4a4   : > { %v1654_v62 = vsel %vm1432_vm3, %v3666_v60, 0.0 }
 0x4ab   : > { %1289 = vrot.lane.b32.xlu1 %v3580_v33, %s3153_s12 }
 0x4af   : > { %1283 = vrot.lane.b32.xlu0 %v3580_v33, %s3154_s30 }
 0x4ce   : > { %1652 = vadd.xlane.f32.xlu0 %v1651_v61 }
 0x4cf   : > { %1655 = vadd.xlane.f32.xlu1 %v1654_v62 }
 0x522   : > { %v1647_v0 = vpop.xlane.xlu0 %1646 }
 0x523   : > { %v1650_v2 = vpop.xlane.xlu1 %1649  ;;  %2893 = vrcp.f32 %v1647_v0 }
 0x524   : > { %2895 = vrcp.f32 %v1650_v2 }
 0x526   : > { %v1284_v5 = vpop.permute.xlu0 %1283 }
 0x527   : > { %v1290_v6 = vpop.permute.xlu1 %1289 }
 0x528   : > { %v1308_v7 = vcombine.low %v1284_v5, %v1290_v6  ;;  %v1309_v8 = vcombine.high %v1284_v5, %v1290_v6  ;;  %v2875_v5 = vld [vmem:[%s3470_s25 + $0x8] sm:$0xff]  }
 0x52a   : > { %v1316_v12 = vrot.slane %v1308_v7, %v3588_v47  ;;  %v1323_v13 = vrot.slane %v1309_v8, %v3588_v47 }
 0x52c   : > { %v1324_v14 = vcombine.low %v1300_v9, %v1316_v12  ;;  %v1325_v15 = vcombine.high %v1300_v9, %v1316_v12  ;;  %v1340_v16 = vcombine.low %v1307_v11, %v1323_v13  ;;  %v1341_v17 = vcombine.high %v1307_v11, %v1323_v13 }
 0x52e   : > { %v1332_v33 = vrot.slane %v1324_v14, %v3590_v53  ;;  %v1339_v18 = vrot.slane %v1325_v15, %v3590_v53  ;;  %v1348_v19 = vrot.slane %v1340_v16, %v3590_v53  ;;  %v1355_v20 = vrot.slane %v1341_v17, %v3590_v53 }
 0x530   : > { %v1360_v21 = vcombine.low %v1332_v33, %v1339_v18  ;;  %v2565_v22 = vcombine.high %v1332_v33, %v1339_v18  ;;  %v1376_v23 = vcombine.low %v1348_v19, %v1355_v20  ;;  %v2566_v24 = vcombine.high %v1348_v19, %v1355_v20  ;;  %v2894_v34 = vpop.eup %2893 }
 0x531   : > { %v2896_v39 = vpop.eup %2895  ;;  %v1661_v46 = vmul.f32 %v2894_v34, %v3652_v48 }
 0x532   : > { %v1367_v25 = vrot.slane %v1360_v21, %v3588_v47  ;;  %v1375_v26 = vrot.slane %v2565_v22, %v3588_v47  ;;  %v1383_v27 = vrot.slane %v1376_v23, %v3588_v47  ;;  %v1391_v28 = vrot.slane %v2566_v24, %v3588_v47 }
 0x533   : > { %v1662_v50 = vmul.f32 %v2896_v39, %v3654_v49  ;;  %v1665_v56 = vpack.c.bf16 %v1661_v46, %v1661_v46 }
 0x534   : > { %v1392_v29 = vcombine.low %v1367_v25, %v1375_v26  ;;  %v1408_v30 = vcombine.low %v1383_v27, %v1391_v28  ;;  %v1393_v31 = vcombine.high %v1367_v25, %v1375_v26  ;;  %v1409_v32 = vcombine.high %v1383_v27, %v1391_v28 }
 0x535   : > { %v1666_v57 = vpack.c.bf16 %v1662_v50, %v1662_v50 }
 0x536   : > { %v1400_v35 = vrot.slane %v1392_v29, %v3590_v53  ;;  %v1416_v36 = vrot.slane %v1408_v30, %v3590_v53  ;;  %v1407_v37 = vrot.slane %v1393_v31, %v3590_v53  ;;  %v1423_v38 = vrot.slane %v1409_v32, %v3590_v53  ;;  %v2876_v32 = vld [vmem:[%s3470_s25] sm:$0xff]   ;;  %s3158_s25 = smov 16  }
 0x538   : > { %v1424_v40 = vcombine.low %v1400_v35, %v1416_v36  ;;  %v1425_v41 = vcombine.high %v1400_v35, %v1416_v36  ;;  %v1426_v42 = vcombine.low %v1407_v37, %v1423_v38  ;;  %v1427_v43 = vcombine.high %v1407_v37, %v1423_v38 }
 0x53a   : > { %v1428_v44 = vpack.c.bf16 %v1424_v40, %v1424_v40  ;;  %v1429_v45 = vpack.c.bf16 %v1425_v41, %v1425_v41  ;;  %v1430_v54 = vpack.c.bf16 %v1426_v42, %v1426_v42  ;;  %v1431_v55 = vpack.c.bf16 %v1427_v43, %v1427_v43 }
 0x53c   : > { %v1674_v51 = vsel %vm1672_vm4, %v1428_v44, 0  ;;  %v1720_v52 = vsel %vm1672_vm4, %v1429_v45, 0  ;;  %v1766_v48 = vsel %vm1672_vm4, %v1430_v54, 0  ;;  %v1812_v49 = vsel %vm1672_vm4, %v1431_v55, 0 }
 0x53d   : > { %2689 = vmatpush3.bf16.msra.mxu1 %v1674_v51  ;;  %2695 = vmatpush3.bf16.msra.mxu0 %v1720_v52 }
 0x53e   : > { %2700 = vmatprep.subr.bf16.mxu1 %v3151_v10  ;;  %2706 = vmatprep.subr.bf16.mxu0 %v3151_v10 }
 0x540   : > { %2691 = vmatmul.mubr.msk.bf16.vlgmr.msra.gmra.mxu1 %vm1432_vm3, %v1665_v56  ;;  %2697 = vmatmul.mubr.msk.bf16.vlgmr.msra.gmra.mxu0 %vm1432_vm3, %v1666_v57 }
 0x541   : > { %2701 = vmatpush3.bf16.msra.mxu1 %v1766_v48  ;;  %2707 = vmatpush3.bf16.msra.mxu0 %v1812_v49 }
 0x542   : > { %2702 = vmatprep.mubr.msk.bf16.mxu1 %vm3152_vm2, %v3151_v10  ;;  %2708 = vmatprep.mubr.msk.bf16.mxu0 %vm3152_vm2, %v3151_v10 }
 0x543   : > { %2712 = vmatprep.subr.bf16.mxu1 %v3151_v10  ;;  %2720 = vmatprep.subr.bf16.mxu0 %v3151_v10 }
 0x557   : > { %v1653_v58 = vpop.xlane.xlu0 %1652 }
 0x558   : > { %2897 = vrcp.f32 %v1653_v58  ;;  %v1656_v61 = vpop.xlane.xlu1 %1655 }
 0x559   : > { %2899 = vrcp.f32 %v1656_v61 }
 0x565   : > { %v2898_v62 = vpop.eup %2897 }
 0x566   : > { %v2900_v63 = vpop.eup %2899  ;;  %v1663_v0 = vmul.f32 %v2898_v62, %v3664_v59 }
 0x567   : > { %v1664_v2 = vmul.f32 %v2900_v63, %v3666_v60 }
 0x568   : > { %v1667_v3 = vpack.c.bf16 %v1663_v0, %v1663_v0 }
 0x569   : > { %v1668_v4 = vpack.c.bf16 %v1664_v2, %v1664_v2 }
 0x56a   : > { %2703 = vmatmul.mubr.msk.bf16.vlgmr.msra.gmra.mxu1 %vm1432_vm3, %v1667_v3 }
 0x56b   : > { %2709 = vmatmul.mubr.msk.bf16.vlgmr.msra.gmra.mxu0 %vm1432_vm3, %v1668_v4  ;;  %2716 = vmatprep.mubr.msk.bf16.mxu1 %vm3152_vm2, %v3151_v10  ;;  %v2577_v4 = vld [vmem:[%s3943_s29] ss:$0 sm:$0xff] }
 0x56c   : > { %2724 = vmatprep.mubr.msk.bf16.mxu0 %vm3152_vm2, %v3151_v10  ;;  %2713 = vmatpush3.bf16.msra.mxu1 %v2875_v5 }
 0x56d   : > { %2714 = vmatprep.subr.bf16.mxu1 %v3151_v10 }
 0x570   : > { %2715 = vmatpush3.bf16.msra.mxu1 %v2876_v32 }
 0x571   : > { %2728 = vmatprep.subr.bf16.mxu1 %v3151_v10 }
 0x600   : > { %v1710_v6 = vpop.f32.mrf.mxu1  ;;  %v1756_v59 = vpop.f32.mrf.mxu0 }
 0x602   : > { %v2692_v7 = vpop.f32.mrf.mxu1  ;;  %v2698_v60 = vpop.f32.mrf.mxu0 }
 0x604   : > { %v1713_v8 = vpop.f32.mrf.mxu1  ;;  %v1759_v9 = vpop.f32.mrf.mxu0 }
 0x606   : > { %v2693_v11 = vpop.f32.mrf.mxu1  ;;  %v2699_v12 = vpop.f32.mrf.mxu0 }
 0x62a   : > { %v1802_v13 = vpop.f32.mrf.mxu1 }
 0x62b   : > { %v1854_v14 = vcombine.low %v1710_v6, %v1802_v13  ;;  %v1855_v15 = vcombine.high %v1710_v6, %v1802_v13  ;;  %v1848_v16 = vpop.f32.mrf.mxu0 }
 0x62c   : > { %v1870_v17 = vcombine.low %v1756_v59, %v1848_v16  ;;  %v1871_v33 = vcombine.high %v1756_v59, %v1848_v16  ;;  %v2704_v18 = vpop.f32.mrf.mxu1  ;;  %v2877_v16 = vld [vmem:[%s3473_s2 + $0x8] sm:$0xff]  }
 0x62d   : > { %v1862_v19 = vrot.slane %v1854_v14, %v3588_v47  ;;  %v1869_v20 = vrot.slane %v1855_v15, %v3588_v47  ;;  %v2710_v21 = vpop.f32.mrf.mxu0  ;;  %2721 = vmatpush3.bf16.msra.mxu0 %v2877_v16 }
 0x62e   : > { %v1878_v22 = vrot.slane %v1870_v17, %v3588_v47  ;;  %v1885_v23 = vrot.slane %v1871_v33, %v3588_v47  ;;  %v1805_v24 = vpop.f32.mrf.mxu1  ;;  %v2878_v17 = vld [vmem:[%s3473_s2] sm:$0xff]   ;;  %2722 = vmatprep.subr.bf16.mxu0 %v3151_v10 }
 0x62f   : > { %v1851_v25 = vpop.f32.mrf.mxu0  ;;  %v2880_v33 = vld [vmem:[%s3523_s14 + $0x10] sm:$0xff]   ;;  %v2582_v24 = vld [vmem:[%s758_s27] ss:$0 sm:$0xff] }
 0x630   : > { %v1886_v26 = vcombine.low %v1862_v19, %v1878_v22  ;;  %v1887_v27 = vcombine.high %v1862_v19, %v1878_v22  ;;  %v1902_v28 = vcombine.low %v1869_v20, %v1885_v23  ;;  %v1903_v29 = vcombine.high %v1869_v20, %v1885_v23  ;;  %v2705_v30 = vpop.f32.mrf.mxu1  ;;  %v2581_v22 = vld [vmem:[%s755_s4] ss:$0 sm:$0xff] }
 0x631   : > { %v2711_v31 = vpop.f32.mrf.mxu0  ;;  %2723 = vmatpush3.bf16.msra.mxu0 %v2878_v17  ;;  %v2583_v30 = vld [vmem:[%s761_s23] ss:$0 sm:$0xff]  ;;  %s3948_s23 = sld [smem:[#allocation21_spill]] }
 0x632   : > { %v1894_v34 = vrot.slane %v1886_v26, %v3590_v53  ;;  %v1901_v35 = vrot.slane %v1887_v27, %v3590_v53  ;;  %v1910_v36 = vrot.slane %v1902_v28, %v3590_v53  ;;  %v1917_v37 = vrot.slane %v1903_v29, %v3590_v53  ;;  %v2881_v28 = vld [vmem:[%s3523_s14 + $0x8] sm:$0xff]   ;;  %v2882_v29 = vld [vmem:[%s3523_s14] sm:$0xff]  }
 0x634   : > { %v1922_v38 = vcombine.low %v1894_v34, %v1901_v35  ;;  %v2575_v39 = vcombine.high %v1894_v34, %v1901_v35  ;;  %v1938_v40 = vcombine.low %v1910_v36, %v1917_v37  ;;  %v2576_v41 = vcombine.high %v1910_v36, %v1917_v37 }
 0x636   : > { %v1929_v42 = vrot.slane %v1922_v38, %v3588_v47  ;;  %v1937_v43 = vrot.slane %v2575_v39, %v3588_v47  ;;  %v1945_v44 = vrot.slane %v1938_v40, %v3588_v47  ;;  %v1953_v45 = vrot.slane %v2576_v41, %v3588_v47 }
 0x637   : > { %p2593_p13 = scmp.ne.s32.totalorder %s3948_s23, 1 }
 0x638   : > { %v1955_v46 = vcombine.high %v1929_v42, %v1937_v43  ;;  %v1971_v50 = vcombine.high %v1945_v44, %v1953_v45  ;;  %v1954_v51 = vcombine.low %v1929_v42, %v1937_v43  ;;  %v1970_v52 = vcombine.low %v1945_v44, %v1953_v45 }
 0x63a   : > { %v1969_v54 = vrot.slane %v1955_v46, %v3590_v53  ;;  %v1985_v55 = vrot.slane %v1971_v50, %v3590_v53  ;;  %v1962_v56 = vrot.slane %v1954_v51, %v3590_v53  ;;  %v1978_v57 = vrot.slane %v1970_v52, %v3590_v53 }
 0x63c   : > { %v1988_v48 = vcombine.low %v1969_v54, %v1985_v55  ;;  %v1987_v49 = vcombine.high %v1962_v56, %v1978_v57  ;;  %v1986_v58 = vcombine.low %v1962_v56, %v1978_v57  ;;  %v1989_v47 = vcombine.high %v1969_v54, %v1985_v55 }
 0x63e   : > { %1995 = vrot.lane.b32.xlu1 %v1988_v48, %s3158_s25  ;;  %1991 = vrot.lane.b32.xlu0 %v1987_v49, %s3159_s9 }
 0x642   : > { %1999 = vrot.lane.b32.xlu0 %v1989_v47, %s3160_s20 }
 0x6b0   : > { %v1992_v61 = vpop.permute.xlu0 %1991  ;;  %v1996_v62 = vpop.permute.xlu1 %1995 }
 0x6b1   : > { %v2002_v63 = vsel %vm1432_vm3, %v1986_v58, %v1992_v61 }
 0x6b2   : > { %v2004_v2 = vsel %vm2003_vm5, %v2002_v63, %v1996_v62 }
 0x6b4   : > { %v2000_v0 = vpop.permute.xlu0 %1999 }
 0x6b5   : > { %v2006_v53 = vsel %vm2005_vm6, %v2004_v2, %v2000_v0 }
 0x6b6   : > { %v2007_v3 = vpack.c.bf16 %v2006_v53, %v2006_v53 }
 0x6b8   : > { %2717 = vmatmul.mubr.msk.bf16.vlgmr.msra.gmra.mxu1 %vm781_vm1, %v2007_v3 }
 0x6b9   : > { %2736 = vmatprep.mubr.msk.bf16.mxu1 %vm3152_vm2, %v3151_v10 }
 0x778   : > { %v2068_v5 = vpop.f32.mrf.mxu1 }
 0x779   : > { %v2069_v6 = vadd.f32 %v2577_v4, %v2068_v5 }
 0x77a   : > { %v2718_v59 = vpop.f32.mrf.mxu1 }
 0x77b   : > { %v2074_v7 = vadd.f32 %v2069_v6, %v3535_v1  ;;  %v2879_v1 = vld [vmem:[%s3523_s14 + $0x18] sm:$0xff]  }
 0x77c   : > { %v2071_v60 = vpop.f32.mrf.mxu1  ;;  %2729 = vmatpush3.bf16.msra.mxu1 %v2879_v1 }
 0x77d   : > { %v2077_v8 = vsel %vm781_vm1, %v2074_v7, 0.0  ;;  %2730 = vmatprep.subr.bf16.mxu1 %v3151_v10 }
 0x77e   : > { %2078 = vadd.xlane.f32.xlu1 %v2077_v8  ;;  %v2719_v9 = vpop.f32.mrf.mxu1 }
 0x780   : > { %2731 = vmatpush3.bf16.msra.mxu1 %v2880_v33 }
 0x781   : > { %2732 = vmatprep.subr.bf16.mxu1 %v3151_v10 }
 0x784   : > { %2733 = vmatpush3.bf16.msra.mxu1 %v2881_v28 }
 0x785   : > { %2734 = vmatprep.subr.bf16.mxu1 %v3151_v10  ;;  %v2587_v10 = vld [vmem:[%s769_s16] ss:$0 sm:$0xff] }
 0x788   : > { %2735 = vmatpush3.bf16.msra.mxu1 %v2882_v29 }
 0x807   : > { %v2079_v11 = vpop.xlane.xlu1 %2078 }
 0x808   : > { %v2080_v12 = vmul.f32 0.03125, %v2079_v11 }
 0x80a   : > { %v2081_v13 = vsub.f32 %v2074_v7, %v2080_v12 }
 0x80c   : > { %v2082_v14 = vmul.f32 %v2081_v13, %v2081_v13 }
 0x80e   : > { %v2083_v15 = vsel %vm781_vm1, %v2082_v14, 0.0 }
 0x80f   : > { %2084 = vadd.xlane.f32.xlu0 %v2083_v15 }
 0x898   : > { %v2085_v18 = vpop.xlane.xlu0 %2084 }
 0x899   : > { %v2086_v19 = vmul.f32 0.03125, %v2085_v18 }
 0x89b   : > { %v2087_v20 = vadd.f32 1e-05, %v2086_v19 }
 0x89d   : > { %2901 = vrsqrt.f32 %v2087_v20 }
 0x8aa   : > { %v2902_v21 = vpop.eup %2901 }
 0x8ab   : > { %v2089_v23 = vmul.f32 %v2902_v21, %v2081_v13 }
 0x8ad   : > { %v2096_v25 = vmul.f32 %v2581_v22, %v2089_v23 }
 0x8af   : > { %v2103_v26 = vadd.f32 %v2582_v24, %v2096_v25 }
 0x8b1   : > { %v2104_v27 = vpack.c.bf16 %v2103_v26, %v2103_v26 }
 0x8b3   : > { %2725 = vmatmul.mubr.msk.bf16.vlgmr.msra.gmra.mxu0 %vm781_vm1, %v2104_v27 }
 0x973   : > { %v2165_v31 = vpop.f32.mrf.mxu0 }
 0x974   : > { %v2166_v32 = vadd.f32 %v2583_v30, %v2165_v31 }
 0x975   : > { %v2726_v34 = vpop.f32.mrf.mxu0 }
 0x976   : > { %v2171_v35 = vmax.f32 %v2166_v32, 0.0 }
 0x977   : > { %v2168_v36 = vpop.f32.mrf.mxu0 }
 0x978   : > { %v2172_v37 = vpack.c.bf16 %v2171_v35, %v2171_v35 }
 0x979   : > { %v2727_v38 = vpop.f32.mrf.mxu0 }
 0x97a   : > { %2737 = vmatmul.mubr.msk.bf16.vlgmr.msra.gmra.mxu1 %vm2212_vm7, %v2172_v37 }
 0xa3a   : > { %v2250_v39 = vpop.f32.mrf.mxu1 }
 0xa3b   : > { %v2251_v40 = vadd.f32 %v2587_v10, %v2250_v39 }
 0xa3c   : > { %v2738_v41 = vpop.f32.mrf.mxu1  ;;  %2261 = sbr.rel (%p2593_p13) target bundleno = 2626 (0xa42), region = 100 }
 0xa3d   : > { %v2256_v42 = vadd.f32 %v2251_v40, %v2074_v7 }
 0xa3e   : > { %v2253_v43 = vpop.f32.mrf.mxu1 }
 0xa3f   : > { %2257 = vst.msk [vmem:[#allocation2] sm:$0xff] %vm781_vm1, %v2256_v42 }
 0xa40   : > { %v2739_v44 = vpop.f32.mrf.mxu1 }
 0xa41   : > { %2262 = vst.msk [vmem:[%s3531_s18] sm:$0xff] %vm781_vm1, %v2256_v42 }
 0xa42 PF: > { %s3949_s14 = sld [smem:[#allocation22_spill]]  ;;  %s2277_s30 = sshll.u32 %s3531_s18, 4  ;;  %s2278_s30 = int_to_ptr.vmem [resolvable:$true] %s2277_s30 }
 0xa43   : > { %s3950_s1 = sld [smem:[#allocation30_spill]]  ;;  %s2264_s13 = scalar_lea.sflag [#allocation5], %s3448_s5 }
 0xa44   : > { %s3951_s11 = sld [smem:[#allocation47_spill]]  ;;  %s3015_s25 = scalar_lea.vmem %s2278_s30, 128 }
 0xa45   : > { %p3016_p12 = scmp.ne.s32.totalorder %s2278_s30, %s3015_s25  ;;  %s3161_s9 = smov [#allocation11]  }
 0xa46   : > { %s3019_s20 = sshll.u32 %s3161_s9, 4  ;;  %s3020_s20 = int_to_ptr.vmem [resolvable:$false] %s3019_s20 }
 0xa47   : > { %s3021_s7 = scalar_lea.vmem %s3020_s20, 256  ;;  %p3022_p3 = scmp.lt.s32.totalorder %s2278_s30, %s3020_s20 }
 0xa48   : > { %s2595_s16 = sshll.u32 %s3949_s14, 7  ;;  %p3023_p2 = scmp.lt.s32.totalorder %s3021_s7, %s3015_s25 }
 0xa49   : > { %p3952_p8 = scmp.ne.s32.totalorder %s3950_s1, 0 }
 0xa4a   : > { %s2275_s12 = scalar_lea.hbm %s3951_s11, %s2595_s16  ;;  %p3024_p10 = por %p3023_p2, %p3022_p3 }
 0xa4b   : > { %p3017_p1 = pnand %p3016_p12, %p3952_p8 }
 0xa4d   : > { %p3018_p0 = pneg %p3017_p1 }
 0xa4f   : > { %p3025_p4 = pnand %p3024_p10, %p3018_p0 }
 0xa51   : > { %3028 = shalt.err (!%p3025_p4)
}
 0xa52   : > { %s3029_s15 = scalar_lea.hbm %s2275_s12, 128  ;;  %s3033_s19 = scalar_lea.hbm %s3951_s11, 256 }
 0xa53   : > { %p3030_p5 = scmp.ne.s32.totalorder %s2275_s12, %s3029_s15  ;;  %p3034_p9 = scmp.lt.s32.totalorder %s2275_s12, %s3951_s11 }
 0xa54   : > { %p3035_p7 = scmp.lt.s32.totalorder %s3033_s19, %s3029_s15 }
 0xa55   : > { %p3031_p6 = pnand %p3030_p5, %p3952_p8 }
 0xa56   : > { %p3036_p13 = por %p3035_p7, %p3034_p9 }
 0xa57   : > { %p3032_p11 = pneg %p3031_p6 }
 0xa59   : > { %p3037_p12 = pnand %p3036_p13, %p3032_p11 }
 0xa5b   : > { %3040 = shalt.err (!%p3037_p12)
}
 0xa5c   : > { %2748 = dma.vmem_to_hbm [thread:$0]  (%p3952_p8), %s2278_s30, 128, %s2275_s12, %s2264_s13  }
 0xa5d PF: > { %s3953_s3 = sld [smem:[#allocation25_spill]] }
 0xa5e   : > { %s3954_s22 = sld [smem:[#allocation18_spill]] }
 0xa5f   : > { %s3955_s8 = sld [smem:[#allocation31_spill]] }
 0xa63   : > { %p2768_p1 = scmp.ge.s32.totalorder %s3953_s3, 2 }
 0xa64   : > { %s2289_s0 = sand.u32 1, %s3954_s22  }
 0xa65   : > { %p3956_p0 = scmp.ne.s32.totalorder %s3955_s8, 0  ;;  %s2290_s6 = scalar_lea.sflag [#allocation5], %s2289_s0 }
 0xa67   : > { %p2764_p3 = pnand %p2768_p1, %p3956_p0 }
 0xa69   : > { %p2765_p2 = pneg %p2764_p3 }
 0xa6b   : > { %3098 = dma.done.wait (%p2765_p2), %s2290_s6, 128  }
 0xa6c   : > { %3100 = vsyncadd (%p2765_p2), %s2290_s6, 4294967168  ;;  %s36_s23 = sadd.s32 1, %s3953_s3   ;;  %s3957_s29 = sld [smem:[#allocation16_spill]] }
 0xa6d   : > { %p33_p10 = scmp.ge.s32.totalorder %s36_s23, 6   ;;  %s3958_s30 = sld [smem:[#allocation17_spill]] }
 0xa6e   : > { %s3959_s15 = sld [smem:[#allocation28_spill]] }
 0xa6f   : > { %s3960_s16 = sld [smem:[#allocation19_spill]] }
 0xa70   : > { %s3961_s17 = sld [smem:[#allocation20_spill]] }
 0xa71   : > { %s3962_s18 = sld [smem:[#allocation32_spill]]  ;;  %35 = sbr.rel (!%p33_p10) target bundleno = 29 (0x1d), region = 196 }
 0xa72   : > { %s3963_s19 = sld [smem:[#allocation23_spill]] }
 0xa73   : > { %s3964_s20 = sld [smem:[#allocation24_spill]] }
 0xa74   : > { %s3965_s21 = sld [smem:[#allocation26_spill]] }
 0xa75   : > { %s3966_s22 = sld [smem:[#allocation29_spill]] }
 0xa76   :  { %2295 = vsyncpa [#allocation4], 1 }
 0xa77   :  { %2297 = vsyncpa [#allocation4 + $0x1], 1 }
 0xa78   :  { %2298 = vsyncpa [#allocation7], 1 }
 0xa79   :  { %2300 = vsyncpa [#allocation7 + $0x1], 1 }
 0xa7a   :  { %2301 = vsyncpa [#allocation10], 1 }
 0xa7b   :  { %2303 = vsyncpa [#allocation10 + $0x1], 1 }
 0xa7c   :  { %2304 = vsyncpa [#allocation5], 1 }
 0xa7d   :  { %2306 = vsyncpa [#allocation5 + $0x1], 1 }

</bundles_post_ra>
